<compile_context>
chip_gen: v7x
topology: tpu7x:2x2x1
jax: 0.10.0
libtpu: 0.0.40
codegen_flags: <defaults>
</compile_context>

<pallas_src>
import math
from functools import partial

import jax
import jax.numpy as jnp
from jax import lax
from jax.experimental import pallas as pl
from jax.experimental.pallas import tpu as pltpu


def _self_attention_layer_kernel(
        x_ref,                          # (B*S, E)   f32
        bn1_scale_ref, bn1_shift_ref,   # (1, E)     f32 (folded BatchNorm1d #1)
        w_qkv_ref, b_qkv_ref,           # (E, 3E) matmul-dtype, (1, 3E) f32
        w_o_ref, b_o_ref,               # (E, E)  matmul-dtype, (1, E)  f32
        bn2_scale_ref, bn2_shift_ref,   # (1, E)     f32 (folded BatchNorm1d #2)
        w1_ref, b1_ref,                 # (E, H)  matmul-dtype, (1, H)  f32
        w2_ref, b2_ref,                 # (H, E)  matmul-dtype, (1, E)  f32
        o_ref,                          # (B, S*E)   f32  lane-dense output
        *, batch: int, seq: int, n_heads: int):
    E = x_ref.shape[1]
    Dh = E // n_heads
    scale = 1.0 / math.sqrt(Dh)
    cd = w_qkv_ref.dtype                # matmul compute dtype (bf16 on the perf path)

    x = x_ref[...]                                              # (B*S, E) f32
    # BatchNorm1d #1 (inference mode, folded to scale/shift)
    x_ln = x * bn1_scale_ref[...] + bn1_shift_ref[...]

    # Fused QKV projection: one MXU pass with N = 3E, f32 accumulation.
    qkv = jnp.dot(x_ln.astype(cd), w_qkv_ref[...],
                  preferred_element_type=jnp.float32) + b_qkv_ref[...]      # (B*S, 3E)

    w_o = w_o_ref[...]                                          # (E, E)
    # Per-(batch, head) scaled dot-product attention.  The head merge is folded into
    # the output projection: attn @ Wo^T == sum_h o_h @ Wo^T[h*Dh:(h+1)*Dh, :],
    # so no per-head lane-sliced concatenate is materialized.
    att_rows = []
    for b in range(batch):
        r = b * seq
        ao = None
        for h in range(n_heads):
            c = h * Dh
            qh = qkv[r:r + seq, c:c + Dh] * scale               # (S, Dh) f32
            kh = qkv[r:r + seq, E + c:E + c + Dh]               # (S, Dh)
            vh = qkv[r:r + seq, 2 * E + c:2 * E + c + Dh]       # (S, Dh)
            # q @ k^T without an explicit transpose: contract on Dh (rhs dim 1).
            s = lax.dot_general(qh, kh, (((1,), (1,)), ((), ())),
                                preferred_element_type=jnp.float32)         # (S, S)
            m = jnp.max(s, axis=-1, keepdims=True)
            p = jnp.exp(s - m)
            p = p * pl.reciprocal(jnp.sum(p, axis=-1, keepdims=True), approx=True)
            oh = jnp.dot(p, vh, preferred_element_type=jnp.float32)         # (S, Dh)
            contrib = jnp.dot(oh.astype(cd), w_o[c:c + Dh, :],
                              preferred_element_type=jnp.float32)           # (S, E)
            ao = contrib if ao is None else ao + contrib
        att_rows.append(ao)
    att_out = jnp.concatenate(att_rows, axis=0) + b_o_ref[...]              # (B*S, E)

    # Residual + BatchNorm1d #2
    hidden = att_out + x
    hidden_ln = hidden * bn2_scale_ref[...] + bn2_shift_ref[...]

    # FFN: Linear(E, H) -> ReLU -> Linear(H, E), then residual.
    ff = jnp.dot(hidden_ln.astype(cd), w1_ref[...],
                 preferred_element_type=jnp.float32) + b1_ref[...]
    ff = jnp.maximum(ff, 0.0)
    ff_out = jnp.dot(ff.astype(cd), w2_ref[...],
                     preferred_element_type=jnp.float32) + b2_ref[...]
    out = ff_out + hidden                                                   # (B*S, E)

    # Lane-dense store: pack each batch's S rows side-by-side along lanes so the
    # output block is (B, S*E) with a 128-multiple last dim (unmasked stores).
    dense_rows = []
    for b in range(batch):
        r = b * seq
        dense_rows.append(jnp.concatenate(
            [out[r + s:r + s + 1, :] for s in range(seq)], axis=1))         # (1, S*E)
    o_ref[...] = jnp.concatenate(dense_rows, axis=0).astype(o_ref.dtype)    # (B, S*E)


def prepare_params(params, *, matmul_dtype=jnp.bfloat16, eps=1e-5):
    """One-time host-side prep: fuse + transpose + cast weights, fold BatchNorm."""
    E = params["in_proj_weight"].shape[1]

    def fold_bn(prefix):
        g, b = params[prefix + "_weight"], params[prefix + "_bias"]
        m, v = params[prefix + "_running_mean"], params[prefix + "_running_var"]
        s = g / jnp.sqrt(v + eps)
        return (s.reshape(1, E).astype(jnp.float32),
                (b - m * s).reshape(1, E).astype(jnp.float32))

    bn1_scale, bn1_shift = fold_bn("bn1")
    bn2_scale, bn2_shift = fold_bn("bn2")
    return {
        "bn1_scale": bn1_scale, "bn1_shift": bn1_shift,
        "bn2_scale": bn2_scale, "bn2_shift": bn2_shift,
        # fused, pre-transposed QKV weight: x @ W_in^T -> columns [q | k | v]
        "w_qkv": params["in_proj_weight"].T.astype(matmul_dtype),           # (E, 3E)
        "b_qkv": params["in_proj_bias"].reshape(1, 3 * E).astype(jnp.float32),
        "w_o": params["out_proj_weight"].T.astype(matmul_dtype),            # (E, E)
        "b_o": params["out_proj_bias"].reshape(1, E).astype(jnp.float32),
        "w1": params["ffn_w1"].T.astype(matmul_dtype),                      # (E, H)
        "b1": params["ffn_b1"].reshape(1, -1).astype(jnp.float32),
        "w2": params["ffn_w2"].T.astype(matmul_dtype),                      # (H, E)
        "b2": params["ffn_b2"].reshape(1, E).astype(jnp.float32),
    }


def self_attention_layer(x, prepared, n_heads):
    """x: (B, S, E) float32.  prepared: output of prepare_params()."""
    B, S, E = x.shape
    H = prepared["w1"].shape[1]
    x2d = x.reshape(B * S, E)           # free row-major reshape outside the kernel

    def full_block(shape):
        return pl.BlockSpec(shape, lambda i: (0, 0))

    out_flat = pl.pallas_call(
        partial(_self_attention_layer_kernel, batch=B, seq=S, n_heads=n_heads),
        out_shape=jax.ShapeDtypeStruct((B, S * E), x.dtype),
        grid_spec=pltpu.PrefetchScalarGridSpec(
            num_scalar_prefetch=0,
            grid=(1,),                          # whole layer in a single grid step
            in_specs=[
                full_block((B * S, E)),                          # x
                full_block((1, E)), full_block((1, E)),          # bn1 scale/shift
                full_block((E, 3 * E)), full_block((1, 3 * E)),  # fused W_qkv, b_qkv
                full_block((E, E)), full_block((1, E)),          # W_o, b_o
                full_block((1, E)), full_block((1, E)),          # bn2 scale/shift
                full_block((E, H)), full_block((1, H)),          # W1, b1
                full_block((H, E)), full_block((1, E)),          # W2, b2
            ],
            out_specs=full_block((B, S * E)),
        ),
        compiler_params=pltpu.CompilerParams(
            dimension_semantics=("arbitrary",)),
    )(x2d,
      prepared["bn1_scale"], prepared["bn1_shift"],
      prepared["w_qkv"], prepared["b_qkv"],
      prepared["w_o"], prepared["b_o"],
      prepared["bn2_scale"], prepared["bn2_shift"],
      prepared["w1"], prepared["b1"],
      prepared["w2"], prepared["b2"])
    return out_flat.reshape(B, S, E)


def _reference_forward(x, params, n_heads, eps=1e-5):
    """Pure-JAX reference reproducing SelfAttentionLayer.forward (eval-mode BN, no mask)."""
    B, S, E = x.shape
    Dh = E // n_heads

    def bn(t, p):
        g, b = params[p + "_weight"], params[p + "_bias"]
        m, v = params[p + "_running_mean"], params[p + "_running_var"]
        return (t - m) / jnp.sqrt(v + eps) * g + b

    x_ln = bn(x.reshape(-1, E), "bn1").reshape(B, S, E)
    w_in, b_in = params["in_proj_weight"], params["in_proj_bias"]
    q = x_ln @ w_in[:E].T + b_in[:E]
    k = x_ln @ w_in[E:2 * E].T + b_in[E:2 * E]
    v = x_ln @ w_in[2 * E:].T + b_in[2 * E:]

    def split(t):
        return t.reshape(B, S, n_heads, Dh).transpose(0, 2, 1, 3)

    qh, kh, vh = split(q), split(k), split(v)
    s = jnp.einsum("bhqd,bhkd->bhqk", qh, kh) / math.sqrt(Dh)
    p = jax.nn.softmax(s, axis=-1)
    attn = jnp.einsum("bhqk,bhkd->bhqd", p, vh).transpose(0, 2, 1, 3).reshape(B, S, E)
    att_out = attn @ params["out_proj_weight"].T + params["out_proj_bias"]
    hidden = att_out + x
    hidden_ln = bn(hidden.reshape(-1, E), "bn2").reshape(B, S, E)
    ff = jax.nn.relu(hidden_ln @ params["ffn_w1"].T + params["ffn_b1"])
    ff_out = ff @ params["ffn_w2"].T + params["ffn_b2"]
    return ff_out + hidden


if __name__ == "__main__":
    # Small shapes consistent with the module: x (B, S, E), FFN hidden_size=128.
    B, S, E, n_heads, ffn_hidden = 2, 8, 32, 4, 128

    key = jax.random.PRNGKey(0)
    ks = jax.random.split(key, 18)

    x = jax.random.normal(ks[0], (B, S, E), jnp.float32)

    params = {
        # nn.MultiheadAttention
        "in_proj_weight": jax.random.normal(ks[1], (3 * E, E), jnp.float32) / math.sqrt(E),
        "in_proj_bias": 0.02 * jax.random.normal(ks[2], (3 * E,), jnp.float32),
        "out_proj_weight": jax.random.normal(ks[3], (E, E), jnp.float32) / math.sqrt(E),
        "out_proj_bias": 0.02 * jax.random.normal(ks[4], (E,), jnp.float32),
        # BatchNorm1d #1 / #2 (eval-mode running stats)
        "bn1_weight": 1.0 + 0.1 * jax.random.normal(ks[5], (E,), jnp.float32),
        "bn1_bias": 0.05 * jax.random.normal(ks[6], (E,), jnp.float32),
        "bn1_running_mean": 0.1 * jax.random.normal(ks[7], (E,), jnp.float32),
        "bn1_running_var": 1.0 + 0.2 * jnp.abs(jax.random.normal(ks[8], (E,), jnp.float32)),
        "bn2_weight": 1.0 + 0.1 * jax.random.normal(ks[9], (E,), jnp.float32),
        "bn2_bias": 0.05 * jax.random.normal(ks[10], (E,), jnp.float32),
        "bn2_running_mean": 0.1 * jax.random.normal(ks[11], (E,), jnp.float32),
        "bn2_running_var": 1.0 + 0.2 * jnp.abs(jax.random.normal(ks[12], (E,), jnp.float32)),
        # FFN
        "ffn_w1": jax.random.normal(ks[13], (ffn_hidden, E), jnp.float32) / math.sqrt(E),
        "ffn_b1": 0.02 * jax.random.normal(ks[14], (ffn_hidden,), jnp.float32),
        "ffn_w2": jax.random.normal(ks[15], (E, ffn_hidden), jnp.float32) / math.sqrt(ffn_hidden),
        "ffn_b2": 0.02 * jax.random.normal(ks[16], (E,), jnp.float32),
    }

    with jax.default_matmul_precision("highest"):
        ref = _reference_forward(x, params, n_heads)
    ref = jax.block_until_ready(ref)

    # 1) f32-weight path: tight check of the kernel structure (approx reciprocal only).
    out_f32 = self_attention_layer(x, prepare_params(params, matmul_dtype=jnp.float32), n_heads)
    out_f32 = jax.block_until_ready(out_f32)
    assert out_f32.shape == (B, S, E)
    err32 = float(jnp.max(jnp.abs(out_f32 - ref)))
    assert jnp.allclose(out_f32, ref, atol=1e-2, rtol=1e-2), f"f32 path max abs err {err32}"

    # 2) bf16-matmul path (perf configuration per review); looser tolerance for
    #    bf16 MXU operands as anticipated by the review.
    out_bf16 = self_attention_layer(x, prepare_params(params, matmul_dtype=jnp.bfloat16), n_heads)
    out_bf16 = jax.block_until_ready(out_bf16)
    err16 = float(jnp.max(jnp.abs(out_bf16 - ref)))
    assert jnp.allclose(out_bf16, ref, atol=5e-2, rtol=5e-2), f"bf16 path max abs err {err16}"

    print("KERNEL_OK")
</pallas_src>

<mosaic_0001>
module attributes {stable_mosaic.version = 11 : i64} {
  func.func @_self_attention_layer_kernel(%arg0: i32, %arg1: memref<16x32xf32, #tpu.memory_space<vmem>>, %arg2: memref<1x32xf32, #tpu.memory_space<vmem>>, %arg3: memref<1x32xf32, #tpu.memory_space<vmem>>, %arg4: memref<32x96xf32, #tpu.memory_space<vmem>>, %arg5: memref<1x96xf32, #tpu.memory_space<vmem>>, %arg6: memref<32x32xf32, #tpu.memory_space<vmem>>, %arg7: memref<1x32xf32, #tpu.memory_space<vmem>>, %arg8: memref<1x32xf32, #tpu.memory_space<vmem>>, %arg9: memref<1x32xf32, #tpu.memory_space<vmem>>, %arg10: memref<32x128xf32, #tpu.memory_space<vmem>>, %arg11: memref<1x128xf32, #tpu.memory_space<vmem>>, %arg12: memref<128x32xf32, #tpu.memory_space<vmem>>, %arg13: memref<1x32xf32, #tpu.memory_space<vmem>>, %arg14: memref<2x256xf32, #tpu.memory_space<vmem>>) attributes {dimension_semantics = [#tpu.dimension_semantics<arbitrary>], iteration_bounds = array<i64: 1>, scalar_prefetch = 0 : i64, scratch_operands = 0 : i64, tpu.core_type = #tpu.core_type<tc>, window_params = [{pipeline_mode = #tpu.pipeline_mode<synchronous>, transform_indices = @transform_0, window_bounds = array<i64: 16, 32>}, {pipeline_mode = #tpu.pipeline_mode<synchronous>, transform_indices = @transform_1, window_bounds = array<i64: 1, 32>}, {pipeline_mode = #tpu.pipeline_mode<synchronous>, transform_indices = @transform_2, window_bounds = array<i64: 1, 32>}, {pipeline_mode = #tpu.pipeline_mode<synchronous>, transform_indices = @transform_3, window_bounds = array<i64: 32, 96>}, {pipeline_mode = #tpu.pipeline_mode<synchronous>, transform_indices = @transform_4, window_bounds = array<i64: 1, 96>}, {pipeline_mode = #tpu.pipeline_mode<synchronous>, transform_indices = @transform_5, window_bounds = array<i64: 32, 32>}, {pipeline_mode = #tpu.pipeline_mode<synchronous>, transform_indices = @transform_6, window_bounds = array<i64: 1, 32>}, {pipeline_mode = #tpu.pipeline_mode<synchronous>, transform_indices = @transform_7, window_bounds = array<i64: 1, 32>}, {pipeline_mode = #tpu.pipeline_mode<synchronous>, transform_indices = @transform_8, window_bounds = array<i64: 1, 32>}, {pipeline_mode = #tpu.pipeline_mode<synchronous>, transform_indices = @transform_9, window_bounds = array<i64: 32, 128>}, {pipeline_mode = #tpu.pipeline_mode<synchronous>, transform_indices = @transform_10, window_bounds = array<i64: 1, 128>}, {pipeline_mode = #tpu.pipeline_mode<synchronous>, transform_indices = @transform_11, window_bounds = array<i64: 128, 32>}, {pipeline_mode = #tpu.pipeline_mode<synchronous>, transform_indices = @transform_12, window_bounds = array<i64: 1, 32>}, {pipeline_mode = #tpu.pipeline_mode<synchronous>, transform_indices = @transform_13, window_bounds = array<i64: 2, 256>}]} {
    %c0 = arith.constant 0 : index
    %c0_0 = arith.constant 0 : index
    %0 = vector.load %arg1[%c0, %c0_0] : memref<16x32xf32, #tpu.memory_space<vmem>>, vector<16x32xf32>
    %c0_1 = arith.constant 0 : index
    %c0_2 = arith.constant 0 : index
    %1 = vector.load %arg2[%c0_1, %c0_2] : memref<1x32xf32, #tpu.memory_space<vmem>>, vector<1x32xf32>
    %2 = vector.broadcast %1 : vector<1x32xf32> to vector<16x32xf32>
    %3 = arith.mulf %0, %2 : vector<16x32xf32>
    %c0_3 = arith.constant 0 : index
    %c0_4 = arith.constant 0 : index
    %4 = vector.load %arg3[%c0_3, %c0_4] : memref<1x32xf32, #tpu.memory_space<vmem>>, vector<1x32xf32>
    %5 = vector.broadcast %4 : vector<1x32xf32> to vector<16x32xf32>
    %6 = arith.addf %3, %5 : vector<16x32xf32>
    %c0_5 = arith.constant 0 : index
    %c0_6 = arith.constant 0 : index
    %7 = vector.load %arg4[%c0_5, %c0_6] : memref<32x96xf32, #tpu.memory_space<vmem>>, vector<32x96xf32>
    %cst = arith.constant dense<0.000000e+00> : vector<16x96xf32>
    %8 = tpu.matmul %6, %7, %cst {dimension_numbers = #tpu.dot_dimension_numbers<[1], [0], [0], [1], [0, 0, 1, 1], [], []>} : vector<16x32xf32>, vector<32x96xf32>, vector<16x96xf32> -> vector<16x96xf32>
    %c0_7 = arith.constant 0 : index
    %c0_8 = arith.constant 0 : index
    %9 = vector.load %arg5[%c0_7, %c0_8] : memref<1x96xf32, #tpu.memory_space<vmem>>, vector<1x96xf32>
    %10 = vector.broadcast %9 : vector<1x96xf32> to vector<16x96xf32>
    %11 = arith.addf %8, %10 : vector<16x96xf32>
    %c0_9 = arith.constant 0 : index
    %c0_10 = arith.constant 0 : index
    %12 = vector.load %arg6[%c0_9, %c0_10] : memref<32x32xf32, #tpu.memory_space<vmem>>, vector<32x32xf32>
    %13 = vector.extract_strided_slice %11 {offsets = [0, 0], sizes = [8, 8], strides = [1, 1]} : vector<16x96xf32> to vector<8x8xf32>
    %cst_11 = arith.constant 0.353553385 : f32
    %14 = vector.broadcast %cst_11 : f32 to vector<8x8xf32>
    %15 = arith.mulf %13, %14 : vector<8x8xf32>
    %16 = vector.extract_strided_slice %11 {offsets = [0, 32], sizes = [8, 8], strides = [1, 1]} : vector<16x96xf32> to vector<8x8xf32>
    %17 = vector.extract_strided_slice %11 {offsets = [0, 64], sizes = [8, 8], strides = [1, 1]} : vector<16x96xf32> to vector<8x8xf32>
    %cst_12 = arith.constant dense<0.000000e+00> : vector<8x8xf32>
    %18 = tpu.matmul %15, %16, %cst_12 {dimension_numbers = #tpu.dot_dimension_numbers<[1], [1], [0], [0], [0, 0, 1, 0], [], []>} : vector<8x8xf32>, vector<8x8xf32>, vector<8x8xf32> -> vector<8x8xf32>
    %cst_13 = arith.constant dense<0xFF800000> : vector<8xf32>
    %19 = vector.multi_reduction <maximumf>, %18, %cst_13 [1] : vector<8x8xf32> to vector<8xf32>
    %20 = vector.shape_cast %19 : vector<8xf32> to vector<8x1xf32>
    %21 = vector.broadcast %20 : vector<8x1xf32> to vector<8x8xf32>
    %22 = arith.subf %18, %21 : vector<8x8xf32>
    %23 = math.exp %22 : vector<8x8xf32>
    %cst_14 = arith.constant dense<0.000000e+00> : vector<8xf32>
    %24 = vector.multi_reduction <add>, %23, %cst_14 [1] : vector<8x8xf32> to vector<8xf32>
    %25 = vector.shape_cast %24 : vector<8xf32> to vector<8x1xf32>
    %26 = tpu.reciprocal %25 {approx = true} : vector<8x1xf32> -> vector<8x1xf32>
    %27 = vector.broadcast %26 : vector<8x1xf32> to vector<8x8xf32>
    %28 = arith.mulf %23, %27 : vector<8x8xf32>
    %cst_15 = arith.constant dense<0.000000e+00> : vector<8x8xf32>
    %29 = tpu.matmul %28, %17, %cst_15 {dimension_numbers = #tpu.dot_dimension_numbers<[1], [0], [0], [1], [0, 0, 1, 1], [], []>} : vector<8x8xf32>, vector<8x8xf32>, vector<8x8xf32> -> vector<8x8xf32>
    %30 = vector.extract_strided_slice %12 {offsets = [0, 0], sizes = [8, 32], strides = [1, 1]} : vector<32x32xf32> to vector<8x32xf32>
    %cst_16 = arith.constant dense<0.000000e+00> : vector<8x32xf32>
    %31 = tpu.matmul %29, %30, %cst_16 {dimension_numbers = #tpu.dot_dimension_numbers<[1], [0], [0], [1], [0, 0, 1, 1], [], []>} : vector<8x8xf32>, vector<8x32xf32>, vector<8x32xf32> -> vector<8x32xf32>
    %32 = vector.extract_strided_slice %11 {offsets = [0, 8], sizes = [8, 8], strides = [1, 1]} : vector<16x96xf32> to vector<8x8xf32>
    %cst_17 = arith.constant 0.353553385 : f32
    %33 = vector.broadcast %cst_17 : f32 to vector<8x8xf32>
    %34 = arith.mulf %32, %33 : vector<8x8xf32>
    %35 = vector.extract_strided_slice %11 {offsets = [0, 40], sizes = [8, 8], strides = [1, 1]} : vector<16x96xf32> to vector<8x8xf32>
    %36 = vector.extract_strided_slice %11 {offsets = [0, 72], sizes = [8, 8], strides = [1, 1]} : vector<16x96xf32> to vector<8x8xf32>
    %cst_18 = arith.constant dense<0.000000e+00> : vector<8x8xf32>
    %37 = tpu.matmul %34, %35, %cst_18 {dimension_numbers = #tpu.dot_dimension_numbers<[1], [1], [0], [0], [0, 0, 1, 0], [], []>} : vector<8x8xf32>, vector<8x8xf32>, vector<8x8xf32> -> vector<8x8xf32>
    %cst_19 = arith.constant dense<0xFF800000> : vector<8xf32>
    %38 = vector.multi_reduction <maximumf>, %37, %cst_19 [1] : vector<8x8xf32> to vector<8xf32>
    %39 = vector.shape_cast %38 : vector<8xf32> to vector<8x1xf32>
    %40 = vector.broadcast %39 : vector<8x1xf32> to vector<8x8xf32>
    %41 = arith.subf %37, %40 : vector<8x8xf32>
    %42 = math.exp %41 : vector<8x8xf32>
    %cst_20 = arith.constant dense<0.000000e+00> : vector<8xf32>
    %43 = vector.multi_reduction <add>, %42, %cst_20 [1] : vector<8x8xf32> to vector<8xf32>
    %44 = vector.shape_cast %43 : vector<8xf32> to vector<8x1xf32>
    %45 = tpu.reciprocal %44 {approx = true} : vector<8x1xf32> -> vector<8x1xf32>
    %46 = vector.broadcast %45 : vector<8x1xf32> to vector<8x8xf32>
    %47 = arith.mulf %42, %46 : vector<8x8xf32>
    %cst_21 = arith.constant dense<0.000000e+00> : vector<8x8xf32>
    %48 = tpu.matmul %47, %36, %cst_21 {dimension_numbers = #tpu.dot_dimension_numbers<[1], [0], [0], [1], [0, 0, 1, 1], [], []>} : vector<8x8xf32>, vector<8x8xf32>, vector<8x8xf32> -> vector<8x8xf32>
    %49 = vector.extract_strided_slice %12 {offsets = [8, 0], sizes = [8, 32], strides = [1, 1]} : vector<32x32xf32> to vector<8x32xf32>
    %cst_22 = arith.constant dense<0.000000e+00> : vector<8x32xf32>
    %50 = tpu.matmul %48, %49, %cst_22 {dimension_numbers = #tpu.dot_dimension_numbers<[1], [0], [0], [1], [0, 0, 1, 1], [], []>} : vector<8x8xf32>, vector<8x32xf32>, vector<8x32xf32> -> vector<8x32xf32>
    %51 = arith.addf %31, %50 : vector<8x32xf32>
    %52 = vector.extract_strided_slice %11 {offsets = [0, 16], sizes = [8, 8], strides = [1, 1]} : vector<16x96xf32> to vector<8x8xf32>
    %cst_23 = arith.constant 0.353553385 : f32
    %53 = vector.broadcast %cst_23 : f32 to vector<8x8xf32>
    %54 = arith.mulf %52, %53 : vector<8x8xf32>
    %55 = vector.extract_strided_slice %11 {offsets = [0, 48], sizes = [8, 8], strides = [1, 1]} : vector<16x96xf32> to vector<8x8xf32>
    %56 = vector.extract_strided_slice %11 {offsets = [0, 80], sizes = [8, 8], strides = [1, 1]} : vector<16x96xf32> to vector<8x8xf32>
    %cst_24 = arith.constant dense<0.000000e+00> : vector<8x8xf32>
    %57 = tpu.matmul %54, %55, %cst_24 {dimension_numbers = #tpu.dot_dimension_numbers<[1], [1], [0], [0], [0, 0, 1, 0], [], []>} : vector<8x8xf32>, vector<8x8xf32>, vector<8x8xf32> -> vector<8x8xf32>
    %cst_25 = arith.constant dense<0xFF800000> : vector<8xf32>
    %58 = vector.multi_reduction <maximumf>, %57, %cst_25 [1] : vector<8x8xf32> to vector<8xf32>
    %59 = vector.shape_cast %58 : vector<8xf32> to vector<8x1xf32>
    %60 = vector.broadcast %59 : vector<8x1xf32> to vector<8x8xf32>
    %61 = arith.subf %57, %60 : vector<8x8xf32>
    %62 = math.exp %61 : vector<8x8xf32>
    %cst_26 = arith.constant dense<0.000000e+00> : vector<8xf32>
    %63 = vector.multi_reduction <add>, %62, %cst_26 [1] : vector<8x8xf32> to vector<8xf32>
    %64 = vector.shape_cast %63 : vector<8xf32> to vector<8x1xf32>
    %65 = tpu.reciprocal %64 {approx = true} : vector<8x1xf32> -> vector<8x1xf32>
    %66 = vector.broadcast %65 : vector<8x1xf32> to vector<8x8xf32>
    %67 = arith.mulf %62, %66 : vector<8x8xf32>
    %cst_27 = arith.constant dense<0.000000e+00> : vector<8x8xf32>
    %68 = tpu.matmul %67, %56, %cst_27 {dimension_numbers = #tpu.dot_dimension_numbers<[1], [0], [0], [1], [0, 0, 1, 1], [], []>} : vector<8x8xf32>, vector<8x8xf32>, vector<8x8xf32> -> vector<8x8xf32>
    %69 = vector.extract_strided_slice %12 {offsets = [16, 0], sizes = [8, 32], strides = [1, 1]} : vector<32x32xf32> to vector<8x32xf32>
    %cst_28 = arith.constant dense<0.000000e+00> : vector<8x32xf32>
    %70 = tpu.matmul %68, %69, %cst_28 {dimension_numbers = #tpu.dot_dimension_numbers<[1], [0], [0], [1], [0, 0, 1, 1], [], []>} : vector<8x8xf32>, vector<8x32xf32>, vector<8x32xf32> -> vector<8x32xf32>
    %71 = arith.addf %51, %70 : vector<8x32xf32>
    %72 = vector.extract_strided_slice %11 {offsets = [0, 24], sizes = [8, 8], strides = [1, 1]} : vector<16x96xf32> to vector<8x8xf32>
    %cst_29 = arith.constant 0.353553385 : f32
    %73 = vector.broadcast %cst_29 : f32 to vector<8x8xf32>
    %74 = arith.mulf %72, %73 : vector<8x8xf32>
    %75 = vector.extract_strided_slice %11 {offsets = [0, 56], sizes = [8, 8], strides = [1, 1]} : vector<16x96xf32> to vector<8x8xf32>
    %76 = vector.extract_strided_slice %11 {offsets = [0, 88], sizes = [8, 8], strides = [1, 1]} : vector<16x96xf32> to vector<8x8xf32>
    %cst_30 = arith.constant dense<0.000000e+00> : vector<8x8xf32>
    %77 = tpu.matmul %74, %75, %cst_30 {dimension_numbers = #tpu.dot_dimension_numbers<[1], [1], [0], [0], [0, 0, 1, 0], [], []>} : vector<8x8xf32>, vector<8x8xf32>, vector<8x8xf32> -> vector<8x8xf32>
    %cst_31 = arith.constant dense<0xFF800000> : vector<8xf32>
    %78 = vector.multi_reduction <maximumf>, %77, %cst_31 [1] : vector<8x8xf32> to vector<8xf32>
    %79 = vector.shape_cast %78 : vector<8xf32> to vector<8x1xf32>
    %80 = vector.broadcast %79 : vector<8x1xf32> to vector<8x8xf32>
    %81 = arith.subf %77, %80 : vector<8x8xf32>
    %82 = math.exp %81 : vector<8x8xf32>
    %cst_32 = arith.constant dense<0.000000e+00> : vector<8xf32>
    %83 = vector.multi_reduction <add>, %82, %cst_32 [1] : vector<8x8xf32> to vector<8xf32>
    %84 = vector.shape_cast %83 : vector<8xf32> to vector<8x1xf32>
    %85 = tpu.reciprocal %84 {approx = true} : vector<8x1xf32> -> vector<8x1xf32>
    %86 = vector.broadcast %85 : vector<8x1xf32> to vector<8x8xf32>
    %87 = arith.mulf %82, %86 : vector<8x8xf32>
    %cst_33 = arith.constant dense<0.000000e+00> : vector<8x8xf32>
    %88 = tpu.matmul %87, %76, %cst_33 {dimension_numbers = #tpu.dot_dimension_numbers<[1], [0], [0], [1], [0, 0, 1, 1], [], []>} : vector<8x8xf32>, vector<8x8xf32>, vector<8x8xf32> -> vector<8x8xf32>
    %89 = vector.extract_strided_slice %12 {offsets = [24, 0], sizes = [8, 32], strides = [1, 1]} : vector<32x32xf32> to vector<8x32xf32>
    %cst_34 = arith.constant dense<0.000000e+00> : vector<8x32xf32>
    %90 = tpu.matmul %88, %89, %cst_34 {dimension_numbers = #tpu.dot_dimension_numbers<[1], [0], [0], [1], [0, 0, 1, 1], [], []>} : vector<8x8xf32>, vector<8x32xf32>, vector<8x32xf32> -> vector<8x32xf32>
    %91 = arith.addf %71, %90 : vector<8x32xf32>
    %92 = vector.extract_strided_slice %11 {offsets = [8, 0], sizes = [8, 8], strides = [1, 1]} : vector<16x96xf32> to vector<8x8xf32>
    %cst_35 = arith.constant 0.353553385 : f32
    %93 = vector.broadcast %cst_35 : f32 to vector<8x8xf32>
    %94 = arith.mulf %92, %93 : vector<8x8xf32>
    %95 = vector.extract_strided_slice %11 {offsets = [8, 32], sizes = [8, 8], strides = [1, 1]} : vector<16x96xf32> to vector<8x8xf32>
    %96 = vector.extract_strided_slice %11 {offsets = [8, 64], sizes = [8, 8], strides = [1, 1]} : vector<16x96xf32> to vector<8x8xf32>
    %cst_36 = arith.constant dense<0.000000e+00> : vector<8x8xf32>
    %97 = tpu.matmul %94, %95, %cst_36 {dimension_numbers = #tpu.dot_dimension_numbers<[1], [1], [0], [0], [0, 0, 1, 0], [], []>} : vector<8x8xf32>, vector<8x8xf32>, vector<8x8xf32> -> vector<8x8xf32>
    %cst_37 = arith.constant dense<0xFF800000> : vector<8xf32>
    %98 = vector.multi_reduction <maximumf>, %97, %cst_37 [1] : vector<8x8xf32> to vector<8xf32>
    %99 = vector.shape_cast %98 : vector<8xf32> to vector<8x1xf32>
    %100 = vector.broadcast %99 : vector<8x1xf32> to vector<8x8xf32>
    %101 = arith.subf %97, %100 : vector<8x8xf32>
    %102 = math.exp %101 : vector<8x8xf32>
    %cst_38 = arith.constant dense<0.000000e+00> : vector<8xf32>
    %103 = vector.multi_reduction <add>, %102, %cst_38 [1] : vector<8x8xf32> to vector<8xf32>
    %104 = vector.shape_cast %103 : vector<8xf32> to vector<8x1xf32>
    %105 = tpu.reciprocal %104 {approx = true} : vector<8x1xf32> -> vector<8x1xf32>
    %106 = vector.broadcast %105 : vector<8x1xf32> to vector<8x8xf32>
    %107 = arith.mulf %102, %106 : vector<8x8xf32>
    %cst_39 = arith.constant dense<0.000000e+00> : vector<8x8xf32>
    %108 = tpu.matmul %107, %96, %cst_39 {dimension_numbers = #tpu.dot_dimension_numbers<[1], [0], [0], [1], [0, 0, 1, 1], [], []>} : vector<8x8xf32>, vector<8x8xf32>, vector<8x8xf32> -> vector<8x8xf32>
    %109 = vector.extract_strided_slice %12 {offsets = [0, 0], sizes = [8, 32], strides = [1, 1]} : vector<32x32xf32> to vector<8x32xf32>
    %cst_40 = arith.constant dense<0.000000e+00> : vector<8x32xf32>
    %110 = tpu.matmul %108, %109, %cst_40 {dimension_numbers = #tpu.dot_dimension_numbers<[1], [0], [0], [1], [0, 0, 1, 1], [], []>} : vector<8x8xf32>, vector<8x32xf32>, vector<8x32xf32> -> vector<8x32xf32>
    %111 = vector.extract_strided_slice %11 {offsets = [8, 8], sizes = [8, 8], strides = [1, 1]} : vector<16x96xf32> to vector<8x8xf32>
    %cst_41 = arith.constant 0.353553385 : f32
    %112 = vector.broadcast %cst_41 : f32 to vector<8x8xf32>
    %113 = arith.mulf %111, %112 : vector<8x8xf32>
    %114 = vector.extract_strided_slice %11 {offsets = [8, 40], sizes = [8, 8], strides = [1, 1]} : vector<16x96xf32> to vector<8x8xf32>
    %115 = vector.extract_strided_slice %11 {offsets = [8, 72], sizes = [8, 8], strides = [1, 1]} : vector<16x96xf32> to vector<8x8xf32>
    %cst_42 = arith.constant dense<0.000000e+00> : vector<8x8xf32>
    %116 = tpu.matmul %113, %114, %cst_42 {dimension_numbers = #tpu.dot_dimension_numbers<[1], [1], [0], [0], [0, 0, 1, 0], [], []>} : vector<8x8xf32>, vector<8x8xf32>, vector<8x8xf32> -> vector<8x8xf32>
    %cst_43 = arith.constant dense<0xFF800000> : vector<8xf32>
    %117 = vector.multi_reduction <maximumf>, %116, %cst_43 [1] : vector<8x8xf32> to vector<8xf32>
    %118 = vector.shape_cast %117 : vector<8xf32> to vector<8x1xf32>
    %119 = vector.broadcast %118 : vector<8x1xf32> to vector<8x8xf32>
    %120 = arith.subf %116, %119 : vector<8x8xf32>
    %121 = math.exp %120 : vector<8x8xf32>
    %cst_44 = arith.constant dense<0.000000e+00> : vector<8xf32>
    %122 = vector.multi_reduction <add>, %121, %cst_44 [1] : vector<8x8xf32> to vector<8xf32>
    %123 = vector.shape_cast %122 : vector<8xf32> to vector<8x1xf32>
    %124 = tpu.reciprocal %123 {approx = true} : vector<8x1xf32> -> vector<8x1xf32>
    %125 = vector.broadcast %124 : vector<8x1xf32> to vector<8x8xf32>
    %126 = arith.mulf %121, %125 : vector<8x8xf32>
    %cst_45 = arith.constant dense<0.000000e+00> : vector<8x8xf32>
    %127 = tpu.matmul %126, %115, %cst_45 {dimension_numbers = #tpu.dot_dimension_numbers<[1], [0], [0], [1], [0, 0, 1, 1], [], []>} : vector<8x8xf32>, vector<8x8xf32>, vector<8x8xf32> -> vector<8x8xf32>
    %128 = vector.extract_strided_slice %12 {offsets = [8, 0], sizes = [8, 32], strides = [1, 1]} : vector<32x32xf32> to vector<8x32xf32>
    %cst_46 = arith.constant dense<0.000000e+00> : vector<8x32xf32>
    %129 = tpu.matmul %127, %128, %cst_46 {dimension_numbers = #tpu.dot_dimension_numbers<[1], [0], [0], [1], [0, 0, 1, 1], [], []>} : vector<8x8xf32>, vector<8x32xf32>, vector<8x32xf32> -> vector<8x32xf32>
    %130 = arith.addf %110, %129 : vector<8x32xf32>
    %131 = vector.extract_strided_slice %11 {offsets = [8, 16], sizes = [8, 8], strides = [1, 1]} : vector<16x96xf32> to vector<8x8xf32>
    %cst_47 = arith.constant 0.353553385 : f32
    %132 = vector.broadcast %cst_47 : f32 to vector<8x8xf32>
    %133 = arith.mulf %131, %132 : vector<8x8xf32>
    %134 = vector.extract_strided_slice %11 {offsets = [8, 48], sizes = [8, 8], strides = [1, 1]} : vector<16x96xf32> to vector<8x8xf32>
    %135 = vector.extract_strided_slice %11 {offsets = [8, 80], sizes = [8, 8], strides = [1, 1]} : vector<16x96xf32> to vector<8x8xf32>
    %cst_48 = arith.constant dense<0.000000e+00> : vector<8x8xf32>
    %136 = tpu.matmul %133, %134, %cst_48 {dimension_numbers = #tpu.dot_dimension_numbers<[1], [1], [0], [0], [0, 0, 1, 0], [], []>} : vector<8x8xf32>, vector<8x8xf32>, vector<8x8xf32> -> vector<8x8xf32>
    %cst_49 = arith.constant dense<0xFF800000> : vector<8xf32>
    %137 = vector.multi_reduction <maximumf>, %136, %cst_49 [1] : vector<8x8xf32> to vector<8xf32>
    %138 = vector.shape_cast %137 : vector<8xf32> to vector<8x1xf32>
    %139 = vector.broadcast %138 : vector<8x1xf32> to vector<8x8xf32>
    %140 = arith.subf %136, %139 : vector<8x8xf32>
    %141 = math.exp %140 : vector<8x8xf32>
    %cst_50 = arith.constant dense<0.000000e+00> : vector<8xf32>
    %142 = vector.multi_reduction <add>, %141, %cst_50 [1] : vector<8x8xf32> to vector<8xf32>
    %143 = vector.shape_cast %142 : vector<8xf32> to vector<8x1xf32>
    %144 = tpu.reciprocal %143 {approx = true} : vector<8x1xf32> -> vector<8x1xf32>
    %145 = vector.broadcast %144 : vector<8x1xf32> to vector<8x8xf32>
    %146 = arith.mulf %141, %145 : vector<8x8xf32>
    %cst_51 = arith.constant dense<0.000000e+00> : vector<8x8xf32>
    %147 = tpu.matmul %146, %135, %cst_51 {dimension_numbers = #tpu.dot_dimension_numbers<[1], [0], [0], [1], [0, 0, 1, 1], [], []>} : vector<8x8xf32>, vector<8x8xf32>, vector<8x8xf32> -> vector<8x8xf32>
    %148 = vector.extract_strided_slice %12 {offsets = [16, 0], sizes = [8, 32], strides = [1, 1]} : vector<32x32xf32> to vector<8x32xf32>
    %cst_52 = arith.constant dense<0.000000e+00> : vector<8x32xf32>
    %149 = tpu.matmul %147, %148, %cst_52 {dimension_numbers = #tpu.dot_dimension_numbers<[1], [0], [0], [1], [0, 0, 1, 1], [], []>} : vector<8x8xf32>, vector<8x32xf32>, vector<8x32xf32> -> vector<8x32xf32>
    %150 = arith.addf %130, %149 : vector<8x32xf32>
    %151 = vector.extract_strided_slice %11 {offsets = [8, 24], sizes = [8, 8], strides = [1, 1]} : vector<16x96xf32> to vector<8x8xf32>
    %cst_53 = arith.constant 0.353553385 : f32
    %152 = vector.broadcast %cst_53 : f32 to vector<8x8xf32>
    %153 = arith.mulf %151, %152 : vector<8x8xf32>
    %154 = vector.extract_strided_slice %11 {offsets = [8, 56], sizes = [8, 8], strides = [1, 1]} : vector<16x96xf32> to vector<8x8xf32>
    %155 = vector.extract_strided_slice %11 {offsets = [8, 88], sizes = [8, 8], strides = [1, 1]} : vector<16x96xf32> to vector<8x8xf32>
    %cst_54 = arith.constant dense<0.000000e+00> : vector<8x8xf32>
    %156 = tpu.matmul %153, %154, %cst_54 {dimension_numbers = #tpu.dot_dimension_numbers<[1], [1], [0], [0], [0, 0, 1, 0], [], []>} : vector<8x8xf32>, vector<8x8xf32>, vector<8x8xf32> -> vector<8x8xf32>
    %cst_55 = arith.constant dense<0xFF800000> : vector<8xf32>
    %157 = vector.multi_reduction <maximumf>, %156, %cst_55 [1] : vector<8x8xf32> to vector<8xf32>
    %158 = vector.shape_cast %157 : vector<8xf32> to vector<8x1xf32>
    %159 = vector.broadcast %158 : vector<8x1xf32> to vector<8x8xf32>
    %160 = arith.subf %156, %159 : vector<8x8xf32>
    %161 = math.exp %160 : vector<8x8xf32>
    %cst_56 = arith.constant dense<0.000000e+00> : vector<8xf32>
    %162 = vector.multi_reduction <add>, %161, %cst_56 [1] : vector<8x8xf32> to vector<8xf32>
    %163 = vector.shape_cast %162 : vector<8xf32> to vector<8x1xf32>
    %164 = tpu.reciprocal %163 {approx = true} : vector<8x1xf32> -> vector<8x1xf32>
    %165 = vector.broadcast %164 : vector<8x1xf32> to vector<8x8xf32>
    %166 = arith.mulf %161, %165 : vector<8x8xf32>
    %cst_57 = arith.constant dense<0.000000e+00> : vector<8x8xf32>
    %167 = tpu.matmul %166, %155, %cst_57 {dimension_numbers = #tpu.dot_dimension_numbers<[1], [0], [0], [1], [0, 0, 1, 1], [], []>} : vector<8x8xf32>, vector<8x8xf32>, vector<8x8xf32> -> vector<8x8xf32>
    %168 = vector.extract_strided_slice %12 {offsets = [24, 0], sizes = [8, 32], strides = [1, 1]} : vector<32x32xf32> to vector<8x32xf32>
    %cst_58 = arith.constant dense<0.000000e+00> : vector<8x32xf32>
    %169 = tpu.matmul %167, %168, %cst_58 {dimension_numbers = #tpu.dot_dimension_numbers<[1], [0], [0], [1], [0, 0, 1, 1], [], []>} : vector<8x8xf32>, vector<8x32xf32>, vector<8x32xf32> -> vector<8x32xf32>
    %170 = arith.addf %150, %169 : vector<8x32xf32>
    %171 = tpu.concatenate %91, %170 in 0 : vector<8x32xf32>, vector<8x32xf32> -> vector<16x32xf32>
    %c0_59 = arith.constant 0 : index
    %c0_60 = arith.constant 0 : index
    %172 = vector.load %arg7[%c0_59, %c0_60] : memref<1x32xf32, #tpu.memory_space<vmem>>, vector<1x32xf32>
    %173 = vector.broadcast %172 : vector<1x32xf32> to vector<16x32xf32>
    %174 = arith.addf %171, %173 : vector<16x32xf32>
    %175 = arith.addf %174, %0 : vector<16x32xf32>
    %c0_61 = arith.constant 0 : index
    %c0_62 = arith.constant 0 : index
    %176 = vector.load %arg8[%c0_61, %c0_62] : memref<1x32xf32, #tpu.memory_space<vmem>>, vector<1x32xf32>
    %177 = vector.broadcast %176 : vector<1x32xf32> to vector<16x32xf32>
    %178 = arith.mulf %175, %177 : vector<16x32xf32>
    %c0_63 = arith.constant 0 : index
    %c0_64 = arith.constant 0 : index
    %179 = vector.load %arg9[%c0_63, %c0_64] : memref<1x32xf32, #tpu.memory_space<vmem>>, vector<1x32xf32>
    %180 = vector.broadcast %179 : vector<1x32xf32> to vector<16x32xf32>
    %181 = arith.addf %178, %180 : vector<16x32xf32>
    %c0_65 = arith.constant 0 : index
    %c0_66 = arith.constant 0 : index
    %182 = vector.load %arg10[%c0_65, %c0_66] : memref<32x128xf32, #tpu.memory_space<vmem>>, vector<32x128xf32>
    %cst_67 = arith.constant dense<0.000000e+00> : vector<16x128xf32>
    %183 = tpu.matmul %181, %182, %cst_67 {dimension_numbers = #tpu.dot_dimension_numbers<[1], [0], [0], [1], [0, 0, 1, 1], [], []>} : vector<16x32xf32>, vector<32x128xf32>, vector<16x128xf32> -> vector<16x128xf32>
    %c0_68 = arith.constant 0 : index
    %c0_69 = arith.constant 0 : index
    %184 = vector.load %arg11[%c0_68, %c0_69] : memref<1x128xf32, #tpu.memory_space<vmem>>, vector<1x128xf32>
    %185 = vector.broadcast %184 : vector<1x128xf32> to vector<16x128xf32>
    %186 = arith.addf %183, %185 : vector<16x128xf32>
    %cst_70 = arith.constant 0.000000e+00 : f32
    %187 = vector.broadcast %cst_70 : f32 to vector<16x128xf32>
    %188 = arith.maximumf %186, %187 : vector<16x128xf32>
    %c0_71 = arith.constant 0 : index
    %c0_72 = arith.constant 0 : index
    %189 = vector.load %arg12[%c0_71, %c0_72] : memref<128x32xf32, #tpu.memory_space<vmem>>, vector<128x32xf32>
    %cst_73 = arith.constant dense<0.000000e+00> : vector<16x32xf32>
    %190 = tpu.matmul %188, %189, %cst_73 {dimension_numbers = #tpu.dot_dimension_numbers<[1], [0], [0], [1], [0, 0, 1, 1], [], []>} : vector<16x128xf32>, vector<128x32xf32>, vector<16x32xf32> -> vector<16x32xf32>
    %c0_74 = arith.constant 0 : index
    %c0_75 = arith.constant 0 : index
    %191 = vector.load %arg13[%c0_74, %c0_75] : memref<1x32xf32, #tpu.memory_space<vmem>>, vector<1x32xf32>
    %192 = vector.broadcast %191 : vector<1x32xf32> to vector<16x32xf32>
    %193 = arith.addf %190, %192 : vector<16x32xf32>
    %194 = arith.addf %193, %175 : vector<16x32xf32>
    %195 = vector.extract_strided_slice %194 {offsets = [0, 0], sizes = [1, 32], strides = [1, 1]} : vector<16x32xf32> to vector<1x32xf32>
    %196 = vector.extract_strided_slice %194 {offsets = [1, 0], sizes = [1, 32], strides = [1, 1]} : vector<16x32xf32> to vector<1x32xf32>
    %197 = vector.extract_strided_slice %194 {offsets = [2, 0], sizes = [1, 32], strides = [1, 1]} : vector<16x32xf32> to vector<1x32xf32>
    %198 = vector.extract_strided_slice %194 {offsets = [3, 0], sizes = [1, 32], strides = [1, 1]} : vector<16x32xf32> to vector<1x32xf32>
    %199 = vector.extract_strided_slice %194 {offsets = [4, 0], sizes = [1, 32], strides = [1, 1]} : vector<16x32xf32> to vector<1x32xf32>
    %200 = vector.extract_strided_slice %194 {offsets = [5, 0], sizes = [1, 32], strides = [1, 1]} : vector<16x32xf32> to vector<1x32xf32>
    %201 = vector.extract_strided_slice %194 {offsets = [6, 0], sizes = [1, 32], strides = [1, 1]} : vector<16x32xf32> to vector<1x32xf32>
    %202 = vector.extract_strided_slice %194 {offsets = [7, 0], sizes = [1, 32], strides = [1, 1]} : vector<16x32xf32> to vector<1x32xf32>
    %203 = tpu.concatenate %195, %196, %197, %198, %199, %200, %201, %202 in 1 : vector<1x32xf32>, vector<1x32xf32>, vector<1x32xf32>, vector<1x32xf32>, vector<1x32xf32>, vector<1x32xf32>, vector<1x32xf32>, vector<1x32xf32> -> vector<1x256xf32>
    %204 = vector.extract_strided_slice %194 {offsets = [8, 0], sizes = [1, 32], strides = [1, 1]} : vector<16x32xf32> to vector<1x32xf32>
    %205 = vector.extract_strided_slice %194 {offsets = [9, 0], sizes = [1, 32], strides = [1, 1]} : vector<16x32xf32> to vector<1x32xf32>
    %206 = vector.extract_strided_slice %194 {offsets = [10, 0], sizes = [1, 32], strides = [1, 1]} : vector<16x32xf32> to vector<1x32xf32>
    %207 = vector.extract_strided_slice %194 {offsets = [11, 0], sizes = [1, 32], strides = [1, 1]} : vector<16x32xf32> to vector<1x32xf32>
    %208 = vector.extract_strided_slice %194 {offsets = [12, 0], sizes = [1, 32], strides = [1, 1]} : vector<16x32xf32> to vector<1x32xf32>
    %209 = vector.extract_strided_slice %194 {offsets = [13, 0], sizes = [1, 32], strides = [1, 1]} : vector<16x32xf32> to vector<1x32xf32>
    %210 = vector.extract_strided_slice %194 {offsets = [14, 0], sizes = [1, 32], strides = [1, 1]} : vector<16x32xf32> to vector<1x32xf32>
    %211 = vector.extract_strided_slice %194 {offsets = [15, 0], sizes = [1, 32], strides = [1, 1]} : vector<16x32xf32> to vector<1x32xf32>
    %212 = tpu.concatenate %204, %205, %206, %207, %208, %209, %210, %211 in 1 : vector<1x32xf32>, vector<1x32xf32>, vector<1x32xf32>, vector<1x32xf32>, vector<1x32xf32>, vector<1x32xf32>, vector<1x32xf32>, vector<1x32xf32> -> vector<1x256xf32>
    %213 = tpu.concatenate %203, %212 in 0 : vector<1x256xf32>, vector<1x256xf32> -> vector<2x256xf32>
    %c0_76 = arith.constant 0 : index
    %c0_77 = arith.constant 0 : index
    %214 = vector.load %arg14[%c0_76, %c0_77] : memref<2x256xf32, #tpu.memory_space<vmem>>, vector<2x256xf32>
    tpu.vector_store %arg14[%c0_76, %c0_77], %213 {strides = array<i32>} : memref<2x256xf32, #tpu.memory_space<vmem>>, vector<2x256xf32>,
    return
  }
  func.func @transform_0(%arg0: i32) -> (i32, i32) {
    %c0_i32 = arith.constant 0 : i32
    %c0_i32_0 = arith.constant 0 : i32
    %c0_i32_1 = arith.constant 0 : i32
    return %c0_i32, %c0_i32_0 : i32, i32
  }
  func.func @transform_1(%arg0: i32) -> (i32, i32) {
    %c0_i32 = arith.constant 0 : i32
    %c0_i32_0 = arith.constant 0 : i32
    %c0_i32_1 = arith.constant 0 : i32
    return %c0_i32, %c0_i32_0 : i32, i32
  }
  func.func @transform_2(%arg0: i32) -> (i32, i32) {
    %c0_i32 = arith.constant 0 : i32
    %c0_i32_0 = arith.constant 0 : i32
    %c0_i32_1 = arith.constant 0 : i32
    return %c0_i32, %c0_i32_0 : i32, i32
  }
  func.func @transform_3(%arg0: i32) -> (i32, i32) {
    %c0_i32 = arith.constant 0 : i32
    %c0_i32_0 = arith.constant 0 : i32
    %c0_i32_1 = arith.constant 0 : i32
    return %c0_i32, %c0_i32_0 : i32, i32
  }
  func.func @transform_4(%arg0: i32) -> (i32, i32) {
    %c0_i32 = arith.constant 0 : i32
    %c0_i32_0 = arith.constant 0 : i32
    %c0_i32_1 = arith.constant 0 : i32
    return %c0_i32, %c0_i32_0 : i32, i32
  }
  func.func @transform_5(%arg0: i32) -> (i32, i32) {
    %c0_i32 = arith.constant 0 : i32
    %c0_i32_0 = arith.constant 0 : i32
    %c0_i32_1 = arith.constant 0 : i32
    return %c0_i32, %c0_i32_0 : i32, i32
  }
  func.func @transform_6(%arg0: i32) -> (i32, i32) {
    %c0_i32 = arith.constant 0 : i32
    %c0_i32_0 = arith.constant 0 : i32
    %c0_i32_1 = arith.constant 0 : i32
    return %c0_i32, %c0_i32_0 : i32, i32
  }
  func.func @transform_7(%arg0: i32) -> (i32, i32) {
    %c0_i32 = arith.constant 0 : i32
    %c0_i32_0 = arith.constant 0 : i32
    %c0_i32_1 = arith.constant 0 : i32
    return %c0_i32, %c0_i32_0 : i32, i32
  }
  func.func @transform_8(%arg0: i32) -> (i32, i32) {
    %c0_i32 = arith.constant 0 : i32
    %c0_i32_0 = arith.constant 0 : i32
    %c0_i32_1 = arith.constant 0 : i32
    return %c0_i32, %c0_i32_0 : i32, i32
  }
  func.func @transform_9(%arg0: i32) -> (i32, i32) {
    %c0_i32 = arith.constant 0 : i32
    %c0_i32_0 = arith.constant 0 : i32
    %c0_i32_1 = arith.constant 0 : i32
    return %c0_i32, %c0_i32_0 : i32, i32
  }
  func.func @transform_10(%arg0: i32) -> (i32, i32) {
    %c0_i32 = arith.constant 0 : i32
    %c0_i32_0 = arith.constant 0 : i32
    %c0_i32_1 = arith.constant 0 : i32
    return %c0_i32, %c0_i32_0 : i32, i32
  }
  func.func @transform_11(%arg0: i32) -> (i32, i32) {
    %c0_i32 = arith.constant 0 : i32
    %c0_i32_0 = arith.constant 0 : i32
    %c0_i32_1 = arith.constant 0 : i32
    return %c0_i32, %c0_i32_0 : i32, i32
  }
  func.func @transform_12(%arg0: i32) -> (i32, i32) {
    %c0_i32 = arith.constant 0 : i32
    %c0_i32_0 = arith.constant 0 : i32
    %c0_i32_1 = arith.constant 0 : i32
    return %c0_i32, %c0_i32_0 : i32, i32
  }
  func.func @transform_13(%arg0: i32) -> (i32, i32) {
    %c0_i32 = arith.constant 0 : i32
    %c0_i32_0 = arith.constant 0 : i32
    %c0_i32_1 = arith.constant 0 : i32
    return %c0_i32, %c0_i32_0 : i32, i32
  }
}

</mosaic_0001>

<bundles_post_ra>
// kernel: tpu_custom_call.1
= control target key start
LH: loop header
LB: loop body
LE: loop exit
PB: predicated region body
PF: predicated region fallthrough
CT: control target
= control target key end

     0   :  { %s3267_s0 = inlined_call_operand.vmem [shape: f32[16,32], index: 0, kind: input, shape index: {}]   ;;  %s3268_s1 = inlined_call_operand.vmem [shape: f32[1,32], index: 1, kind: input, shape index: {}]   ;;  %s3269_s2 = inlined_call_operand.vmem [shape: f32[1,32], index: 2, kind: input, shape index: {}]   ;;  %s3270_s3 = inlined_call_operand.vmem [shape: f32[32,96], index: 3, kind: input, shape index: {}]   ;;  %s3271_s4 = inlined_call_operand.vmem [shape: f32[1,96], index: 4, kind: input, shape index: {}]   ;;  %s3272_s5 = inlined_call_operand.vmem [shape: f32[32,32], index: 5, kind: input, shape index: {}]   ;;  %s3273_s6 = inlined_call_operand.vmem [shape: f32[1,32], index: 6, kind: input, shape index: {}]   ;;  %s3274_s7 = inlined_call_operand.vmem [shape: f32[1,32], index: 7, kind: input, shape index: {}]   ;;  %s3275_s8 = inlined_call_operand.vmem [shape: f32[1,32], index: 8, kind: input, shape index: {}]   ;;  %s3276_s9 = inlined_call_operand.vmem [shape: f32[32,128], index: 9, kind: input, shape index: {}]   ;;  %s3277_s10 = inlined_call_operand.vmem [shape: f32[1,128], index: 10, kind: input, shape index: {}]   ;;  %s3278_s11 = inlined_call_operand.vmem [shape: f32[128,32], index: 11, kind: input, shape index: {}]   ;;  %s3279_s12 = inlined_call_operand.vmem [shape: f32[1,32], index: 12, kind: input, shape index: {}]   ;;  %s3280_s13 = inlined_call_operand.hbm [shape: f32[2,256], index: 13, kind: output, shape index: {}]  }
   0x1   :  { %v65_v0 = vld [vmem:[%s3270_s3] sm:$0xff]  ;;  %v66_v1 = vld [vmem:[%s3270_s3 + $0x8] sm:$0xff]  ;;  %v67_v2 = vld [vmem:[%s3270_s3 + $0x10] sm:$0xff] }
   0x2   :  { %v2699_v3 = vpack.c.bf16 %v66_v1, %v65_v0  ;;  %v68_v4 = vld [vmem:[%s3270_s3 + $0x18] sm:$0xff]  ;;  %v2918_v5 = vld [vmem:[%s3267_s0] sm:$0xff]  ;;  %v2923_v6 = vld [vmem:[%s3267_s0 + $0x8] sm:$0xff] }
   0x3   :  { %v2703_v7 = vpack.c.bf16 %v68_v4, %v67_v2  ;;  %v2399_v8 = vld [vmem:[%s3268_s1] ss:$0 sm:$0xff] }
   0x4   :  { %v2400_v9 = vld [vmem:[%s3269_s2] ss:$0 sm:$0xff] }
   0x5   :  { %18 = vsyncpa [#allocation3], 0  ;;  %2700 = vmatprep.subr.bf16.mxu0 %v2699_v3  ;;  %v54_v10 = vmul.f32 %v2399_v8, %v2918_v5  ;;  %v55_v11 = vmul.f32 %v2399_v8, %v2923_v6  ;;  %vm76_vm0 = vcmask 261120   ;;  %v2818_v14 = vmov 0.0   ;;  %v2401_v15 = vld [vmem:[%s3271_s4] ss:$0 sm:$0xff] }
   0x6   :  { %2702 = vmatpush3.bf16.msra.mxu0 %v2699_v3  ;;  %2558 = vmatprep.subr.mxu1 %v2818_v14  ;;  %vm2819_vm1 = vmmov 0   ;;  %s2820_s2 = smov 64   ;;  %s2821_s3 = smov 96   ;;  %vm166_vm2 = vcmask 64512   ;;  %v2979_v36 = vld [vmem:[%s3272_s5] sm:$0xff]  ;;  %v2998_v53 = vld [vmem:[%s3272_s5 + $0x8] sm:$0xff] }
   0x7   :  { %2704 = vmatprep.subr.bf16.mxu0 %v2703_v7  ;;  %v63_v12 = vadd.f32 %v2400_v9, %v54_v10  ;;  %v64_v13 = vadd.f32 %v2400_v9, %v55_v11  ;;  %2560 = vmatprep.mubr.msk.f32.mxu1 %vm2819_vm1, %v2818_v14  ;;  %s2822_s24 = smov 88   ;;  %s2823_s4 = smov 120   ;;  %v3027_v8 = vld [vmem:[%s3272_s5 + $0x10] sm:$0xff]  ;;  %vm2324_vm3 = vcmask 523264   ;;  %vm2326_vm4 = vcmask 785408  }
   0x8   :  { %2559 = vmatpush3.msra.mxu1 %v2979_v36  ;;  %s2824_s27 = smov 56   ;;  %s2825_s28 = smov 80   ;;  %vm2370_vm5 = vcmask 1040384  }
   0x9   :  { %2530 = vmatprep.mubr.msk.f32.mxu0 %vm76_vm0, %v63_v12  ;;  %2568 = vmatprep.subr.mxu1 %v2818_v14  ;;  %s2826_s29 = smov 112   ;;  %s2827_s15 = smov 48  }
   0xa   :  { %2706 = vmatpush3.bf16.msra.mxu0 %v2703_v7  ;;  %s2828_s16 = smov 72   ;;  %s2829_s17 = smov 104  }
   0xb   :  { %2533 = vmatprep.subr.mxu0 %v2818_v14  ;;  %s2830_s18 = smov 40  }
   0xd   :  { %2531 = vmatmul.mubr.msk.f32.vlgmr.msra.gmra.mrb[0].mxu0 %vm76_vm0, %v64_v13 }
   0xe   :  { %2535 = vmatprep.mubr.msk.f32.mxu0 %vm2819_vm1, %v2818_v14 }
  0xe0   :  { %v2532_v16 = vpop.f32.mrb[0].mxu0 }
  0xe1   :  { %v2944_v17 = vadd.f32 %v2532_v16, %v2401_v15  ;;  %v149_v18 = vpop.f32.mrb[1].mxu0 }
  0xe2   :  { %v2946_v19 = vadd.f32 %v2401_v15, %v149_v18 }
  0xe4   :  { %253 = vrot.lane.b32.xlu1 %v2946_v19, %s2820_s2  ;;  %164 = vrot.lane.b32.xlu0 %v2946_v19, %s2821_s3  ;;  %v2956_v21 = vmul.f32 0.35355338, %v2946_v19 }
  0xe8   :  { %331 = vrot.lane.b32.xlu1 %v2946_v19, %s2822_s24 }
 0x156   :  { %v165_v20 = vpop.permute.xlu0 %164  ;;  %v254_v22 = vpop.permute.xlu1 %253 }
 0x157   :  { %2534 = vmatpush3.xpose.msk.msra.mxu0 %vm166_vm2, %v165_v20 }
 0x158   :  { %2538 = vmatprep.subr.mxu0 %v2818_v14 }
 0x15a   :  { %2536 = vmatmul.mubr.msk.f32.vlgmr.msra.gmra.mrb[2].mxu0 %vm166_vm2, %v2956_v21  ;;  %v332_v31 = vpop.permute.xlu1 %331 }
 0x15b   :  { %2539 = vmatpush3.msra.mxu0 %v254_v22  ;;  %2540 = vmatprep.mubr.msk.f32.mxu0 %vm2819_vm1, %v2818_v14  ;;  %v3045_v22 = vmul.f32 0.35355338, %v2944_v17 }
 0x15c   :  { %2543 = vmatprep.subr.mxu0 %v2818_v14 }
 0x22d   :  { %v238_v23 = vpop.f32.mrb[2].mxu0 }
 0x22e   :  { %v2537_v24 = vpop.f32.mrb[3].mxu0  ;;  %v242_v25 = vsel %vm166_vm2, %v238_v23, -inf }
 0x22f   :  { %243 = vmax.xlane.f32.xlu0 %v242_v25 }
 0x2bc   :  { %v244_v26 = vpop.xlane.xlu0 %243 }
 0x2bd   :  { %v245_v27 = vsub.f32 %v238_v23, %v244_v26 }
 0x2bf   :  { %v246_v28 = vmul.f32 1.442695, %v245_v27 }
 0x2c1   :  { %2762 = vpow2.f32 %v246_v28 }
 0x2cb   :  { %v2763_v29 = vpop.eup %2762 }
 0x2cc   :  { %v248_v30 = vsel %vm166_vm2, %v2763_v29, 0.0 }
 0x2cd   :  { %249 = vadd.xlane.f32.xlu1 %v248_v30 }
 0x2de   :  { %329 = vrot.lane.b32.xlu1 %v2956_v21, %s2823_s4 }
 0x35a   :  { %v250_v32 = vpop.xlane.xlu1 %249 }
 0x35b   :  { %2764 = vrcp.f32 %v250_v32 }
 0x35e   :  { %v330_v35 = vpop.permute.xlu1 %329 }
 0x365   :  { %v2765_v33 = vpop.eup %2764 }
 0x366   :  { %v252_v34 = vmul.f32 %v2765_v33, %v2763_v29 }
 0x368   :  { %2541 = vmatmul.mubr.msk.f32.vlgmr.msra.gmra.mrb[4].mxu0 %vm166_vm2, %v252_v34 }
 0x369   :  { %2544 = vmatpush3.xpose.msk.msra.mxu0 %vm166_vm2, %v332_v31  ;;  %2545 = vmatprep.mubr.msk.f32.mxu0 %vm2819_vm1, %v2818_v14 }
 0x36a   :  { %2548 = vmatprep.subr.mxu0 %v2818_v14 }
 0x36c   :  { %2546 = vmatmul.mubr.msk.f32.vlgmr.msra.gmra.mrb[6].mxu0 %vm166_vm2, %v330_v35 }
 0x36d   :  { %2550 = vmatprep.mubr.msk.f32.mxu0 %vm2819_vm1, %v2818_v14 }
 0x43b   :  { %v325_v37 = vpop.f32.mrb[4].mxu0 }
 0x43c   :  { %v2542_v38 = vpop.f32.mrb[5].mxu0  ;;  %2561 = vmatmul.mubr.msk.f32.vlgmr.msra.gmra.mrb[0].mxu1 %vm166_vm2, %v325_v37 }
 0x43d   :  { %2570 = vmatprep.mubr.msk.f32.mxu1 %vm2819_vm1, %v2818_v14  ;;  %v3073_v38 = vld [vmem:[%s3272_s5 + $0x18] sm:$0xff] }
 0x43f   :  { %v403_v39 = vpop.f32.mrb[6].mxu0 }
 0x440   :  { %v2547_v40 = vpop.f32.mrb[7].mxu0  ;;  %v407_v41 = vsel %vm166_vm2, %v403_v39, -inf }
 0x441   :  { %408 = vmax.xlane.f32.xlu1 %v407_v41 }
 0x4ce   :  { %v409_v42 = vpop.xlane.xlu1 %408 }
 0x4cf   :  { %v410_v43 = vsub.f32 %v403_v39, %v409_v42 }
 0x4d1   :  { %v411_v44 = vmul.f32 1.442695, %v410_v43 }
 0x4d3   :  { %2766 = vpow2.f32 %v411_v44 }
 0x4dd   :  { %v2767_v45 = vpop.eup %2766 }
 0x4de   :  { %v413_v46 = vsel %vm166_vm2, %v2767_v45, 0.0 }
 0x4df   :  { %414 = vadd.xlane.f32.xlu0 %v413_v46 }
 0x4f5   :  { %418 = vrot.lane.b32.xlu0 %v2946_v19, %s2824_s27 }
 0x4f9   :  { %642 = vrot.lane.b32.xlu0 %v2946_v19, %s2825_s28 }
 0x4fd   :  { %640 = vrot.lane.b32.xlu0 %v2956_v21, %s2826_s29 }
 0x50f   :  { %v636_v47 = vpop.f32.mrb[0].mxu1 }
 0x510   :  { %v2562_v48 = vpop.f32.mrb[1].mxu1 }
 0x56c   :  { %v415_v49 = vpop.xlane.xlu0 %414 }
 0x56d   :  { %2768 = vrcp.f32 %v415_v49 }
 0x570   :  { %v419_v50 = vpop.permute.xlu0 %418 }
 0x571   :  { %2549 = vmatpush3.msra.mxu0 %v419_v50 }
 0x572   :  { %2553 = vmatprep.subr.mxu0 %v2818_v14 }
 0x574   :  { %v643_v54 = vpop.permute.xlu0 %642 }
 0x577   :  { %v2769_v51 = vpop.eup %2768 }
 0x578   :  { %v417_v52 = vmul.f32 %v2769_v51, %v2767_v45  ;;  %v641_v57 = vpop.permute.xlu0 %640 }
 0x57a   :  { %2551 = vmatmul.mubr.msk.f32.vlgmr.msra.gmra.mrb[8].mxu0 %vm166_vm2, %v417_v52 }
 0x57b   :  { %2554 = vmatpush3.msra.mxu0 %v2998_v53  ;;  %2555 = vmatprep.mubr.msk.f32.mxu0 %vm2819_vm1, %v2818_v14 }
 0x57c   :  { %2563 = vmatprep.subr.mxu0 %v2818_v14 }
 0x64d   :  { %v490_v55 = vpop.f32.mrb[8].mxu0 }
 0x64e   :  { %v2552_v56 = vpop.f32.mrb[9].mxu0  ;;  %2556 = vmatmul.mubr.msk.f32.vlgmr.msra.gmra.mrb[10].mxu0 %vm166_vm2, %v490_v55 }
 0x64f   :  { %2564 = vmatpush3.xpose.msk.msra.mxu0 %vm166_vm2, %v643_v54  ;;  %2565 = vmatprep.mubr.msk.f32.mxu0 %vm2819_vm1, %v2818_v14 }
 0x650   :  { %2573 = vmatprep.subr.mxu0 %v2818_v14 }
 0x652   :  { %2566 = vmatmul.mubr.msk.f32.vlgmr.msra.gmra.mrb[12].mxu0 %vm166_vm2, %v641_v57 }
 0x653   :  { %2575 = vmatprep.mubr.msk.f32.mxu0 %vm2819_vm1, %v2818_v14  ;;  %2574 = vmatpush3.msra.mxu0 %v3027_v8 }
 0x654   :  { %2583 = vmatprep.subr.mxu0 %v2818_v14 }
 0x721   :  { %v563_v58 = vpop.f32.mrb[10].mxu0 }
 0x722   :  { %v637_v59 = vadd.f32 %v636_v47, %v563_v58  ;;  %v2557_v60 = vpop.f32.mrb[11].mxu0 }
 0x725   :  { %v714_v61 = vpop.f32.mrb[12].mxu0 }
 0x726   :  { %v2567_v62 = vpop.f32.mrb[13].mxu0  ;;  %v718_v63 = vsel %vm166_vm2, %v714_v61, -inf }
 0x727   :  { %719 = vmax.xlane.f32.xlu1 %v718_v63 }
 0x738   :  { %729 = vrot.lane.b32.xlu1 %v2946_v19, %s2827_s15 }
 0x73c   :  { %881 = vrot.lane.b32.xlu1 %v2946_v19, %s2828_s16 }
 0x740   :  { %879 = vrot.lane.b32.xlu1 %v2956_v21, %s2829_s17 }
 0x7b4   :  { %v720_v0 = vpop.xlane.xlu1 %719 }
 0x7b5   :  { %v721_v1 = vsub.f32 %v714_v61, %v720_v0 }
 0x7b7   :  { %v722_v2 = vmul.f32 1.442695, %v721_v1 }
 0x7b8   :  { %v730_v3 = vpop.permute.xlu1 %729 }
 0x7b9   :  { %2770 = vpow2.f32 %v722_v2  ;;  %2569 = vmatpush3.msra.mxu1 %v730_v3 }
 0x7ba   :  { %2578 = vmatprep.subr.mxu1 %v2818_v14 }
 0x7bc   :  { %v882_v11 = vpop.permute.xlu1 %881 }
 0x7c0   :  { %v880_v13 = vpop.permute.xlu1 %879 }
 0x7c3   :  { %v2771_v4 = vpop.eup %2770 }
 0x7c4   :  { %v724_v7 = vsel %vm166_vm2, %v2771_v4, 0.0 }
 0x7c5   :  { %725 = vadd.xlane.f32.xlu0 %v724_v7 }
 0x7db   :  { %968 = vrot.lane.b32.xlu0 %v2946_v19, %s2830_s18 }
 0x852   :  { %v726_v9 = vpop.xlane.xlu0 %725 }
 0x853   :  { %2772 = vrcp.f32 %v726_v9 }
 0x856   :  { %v969_v16 = vpop.permute.xlu0 %968 }
 0x85d   :  { %v2773_v10 = vpop.eup %2772 }
 0x85e   :  { %v728_v12 = vmul.f32 %v2773_v10, %v2771_v4 }
 0x860   :  { %2571 = vmatmul.mubr.msk.f32.vlgmr.msra.gmra.mrb[2].mxu1 %vm166_vm2, %v728_v12 }
 0x861   :  { %2579 = vmatpush3.xpose.msk.msra.mxu1 %vm166_vm2, %v882_v11  ;;  %2580 = vmatprep.mubr.msk.f32.mxu1 %vm2819_vm1, %v2818_v14 }
 0x862   :  { %2588 = vmatprep.subr.mxu1 %v2818_v14 }
 0x864   :  { %2581 = vmatmul.mubr.msk.f32.vlgmr.msra.gmra.mrb[4].mxu1 %vm166_vm2, %v880_v13 }
 0x865   :  { %2590 = vmatprep.mubr.msk.f32.mxu1 %vm2819_vm1, %v2818_v14  ;;  %2589 = vmatpush3.msra.mxu1 %v3073_v38 }
 0x866   :  { %2598 = vmatprep.subr.mxu1 %v2818_v14 }
 0x933   :  { %v801_v15 = vpop.f32.mrb[2].mxu1 }
 0x934   :  { %v2572_v18 = vpop.f32.mrb[3].mxu1  ;;  %2576 = vmatmul.mubr.msk.f32.vlgmr.msra.gmra.mrb[14].mxu0 %vm166_vm2, %v801_v15 }
 0x935   :  { %2584 = vmatpush3.msra.mxu0 %v969_v16  ;;  %2585 = vmatprep.mubr.msk.f32.mxu0 %vm2819_vm1, %v2818_v14 }
 0x936   :  { %2593 = vmatprep.subr.mxu0 %v2818_v14 }
 0x937   :  { %v953_v19 = vpop.f32.mrb[4].mxu1 }
 0x938   :  { %v2582_v20 = vpop.f32.mrb[5].mxu1  ;;  %v957_v21 = vsel %vm166_vm2, %v953_v19, -inf }
 0x939   :  { %958 = vmax.xlane.f32.xlu1 %v957_v21 }
 0x94a   :  { %1284 = vrot.lane.b32.xlu1 %v3045_v22, %s2823_s4 }
 0x9c6   :  { %v959_v23 = vpop.xlane.xlu1 %958 }
 0x9c7   :  { %v960_v24 = vsub.f32 %v953_v19, %v959_v23 }
 0x9c9   :  { %v961_v25 = vmul.f32 1.442695, %v960_v24 }
 0x9ca   :  { %v1285_v37 = vpop.permute.xlu1 %1284 }
 0x9cb   :  { %2774 = vpow2.f32 %v961_v25 }
 0x9d5   :  { %v2775_v26 = vpop.eup %2774 }
 0x9d6   :  { %v963_v27 = vsel %vm166_vm2, %v2775_v26, 0.0 }
 0x9d7   :  { %964 = vadd.xlane.f32.xlu0 %v963_v27 }
 0x9ed   :  { %1120 = vrot.lane.b32.xlu0 %v2944_v17, %s2821_s3 }
 0x9f1   :  { %1286 = vrot.lane.b32.xlu0 %v2944_v17, %s2822_s24 }
 0xa07   :  { %v874_v28 = vpop.f32.mrb[14].mxu0 }
 0xa08   :  { %v878_v29 = vadd.f32 %v874_v28, %v637_v59  ;;  %v2577_v30 = vpop.f32.mrb[15].mxu0 }
 0xa64   :  { %v965_v31 = vpop.xlane.xlu0 %964 }
 0xa65   :  { %2776 = vrcp.f32 %v965_v31 }
 0xa68   :  { %v1121_v34 = vpop.permute.xlu0 %1120 }
 0xa6c   :  { %v1287_v35 = vpop.permute.xlu0 %1286 }
 0xa6f   :  { %v2777_v32 = vpop.eup %2776 }
 0xa70   :  { %v967_v33 = vmul.f32 %v2777_v32, %v2775_v26 }
 0xa72   :  { %2586 = vmatmul.mubr.msk.f32.vlgmr.msra.gmra.mrb[16].mxu0 %vm166_vm2, %v967_v33 }
 0xa73   :  { %2594 = vmatpush3.xpose.msk.msra.mxu0 %vm166_vm2, %v1121_v34  ;;  %2595 = vmatprep.mubr.msk.f32.mxu0 %vm2819_vm1, %v2818_v14 }
 0xa74   :  { %2603 = vmatprep.subr.mxu0 %v2818_v14 }
 0xa76   :  { %2596 = vmatmul.mubr.msk.f32.vlgmr.msra.gmra.mrb[18].mxu0 %vm166_vm2, %v3045_v22 }
 0xa77   :  { %2604 = vmatpush3.xpose.msk.msra.mxu0 %vm166_vm2, %v1287_v35  ;;  %2605 = vmatprep.mubr.msk.f32.mxu0 %vm2819_vm1, %v2818_v14 }
 0xa78   :  { %2613 = vmatprep.subr.mxu0 %v2818_v14 }
 0xa7a   :  { %2606 = vmatmul.mubr.msk.f32.vlgmr.msra.gmra.mrb[20].mxu0 %vm166_vm2, %v1285_v37 }
 0xa7b   :  { %2614 = vmatpush3.msra.mxu0 %v2998_v53  ;;  %2615 = vmatprep.mubr.msk.f32.mxu0 %vm2819_vm1, %v2818_v14 }
 0xa7c   :  { %2623 = vmatprep.subr.mxu0 %v2818_v14 }
 0xb45   :  { %v1040_v39 = vpop.f32.mrb[16].mxu0 }
 0xb46   :  { %v2587_v40 = vpop.f32.mrb[17].mxu0  ;;  %2591 = vmatmul.mubr.msk.f32.vlgmr.msra.gmra.mrb[6].mxu1 %vm166_vm2, %v1040_v39 }
 0xb47   :  { %2600 = vmatprep.mubr.msk.f32.mxu1 %vm2819_vm1, %v2818_v14 }
 0xb49   :  { %v1193_v41 = vpop.f32.mrb[18].mxu0 }
 0xb4a   :  { %v2597_v42 = vpop.f32.mrb[19].mxu0  ;;  %v1197_v43 = vsel %vm166_vm2, %v1193_v41, -inf }
 0xb4b   :  { %1198 = vmax.xlane.f32.xlu0 %v1197_v43 }
 0xb4d   :  { %v1358_v44 = vpop.f32.mrb[20].mxu0 }
 0xb4e   :  { %v2607_v45 = vpop.f32.mrb[21].mxu0  ;;  %v1362_v46 = vsel %vm166_vm2, %v1358_v44, -inf }
 0xb4f   :  { %1363 = vmax.xlane.f32.xlu1 %v1362_v46  ;;  %v3147_v46 = vld [vmem:[%s3273_s6] ss:$0 sm:$0xff] }
 0xb60   :  { %1373 = vrot.lane.b32.xlu1 %v2944_v17, %s2824_s27 }
 0xbd8   :  { %v1199_v47 = vpop.xlane.xlu0 %1198 }
 0xbd9   :  { %v1200_v48 = vsub.f32 %v1193_v41, %v1199_v47 }
 0xbdb   :  { %v1201_v49 = vmul.f32 1.442695, %v1200_v48 }
 0xbdc   :  { %v1364_v50 = vpop.xlane.xlu1 %1363 }
 0xbdd   :  { %2778 = vpow2.f32 %v1201_v49  ;;  %v1365_v51 = vsub.f32 %v1358_v44, %v1364_v50  ;;  %v2437_v49 = vld [vmem:[%s3274_s7] ss:$0 sm:$0xff] }
 0xbdf   :  { %v1366_v52 = vmul.f32 1.442695, %v1365_v51  ;;  %v2438_v51 = vld [vmem:[%s3275_s8] ss:$0 sm:$0xff] }
 0xbe0   :  { %v1374_v1 = vpop.permute.xlu1 %1373 }
 0xbe1   :  { %2780 = vpow2.f32 %v1366_v52 }
 0xbe7   :  { %v2779_v53 = vpop.eup %2778 }
 0xbe8   :  { %v1203_v54 = vsel %vm166_vm2, %v2779_v53, 0.0 }
 0xbe9   :  { %1204 = vadd.xlane.f32.xlu0 %v1203_v54 }
 0xbeb   :  { %v2781_v55 = vpop.eup %2780 }
 0xbec   :  { %v1368_v56 = vsel %vm166_vm2, %v2781_v55, 0.0 }
 0xbed   :  { %1369 = vadd.xlane.f32.xlu0 %v1368_v56  ;;  %v2102_v56 = vld [vmem:[%s3276_s9] sm:$0xff] }
 0xc03   :  { %1208 = vrot.lane.b32.xlu0 %v2944_v17, %s2820_s2 }
 0xc07   :  { %1597 = vrot.lane.b32.xlu0 %v2944_v17, %s2825_s28 }
 0xc0b   :  { %1595 = vrot.lane.b32.xlu0 %v3045_v22, %s2826_s29 }
 0xc19   :  { %v1113_v57 = vpop.f32.mrb[6].mxu1 }
 0xc1a   :  { %v3092_v58 = vadd.f32 %v1113_v57, %v878_v29  ;;  %v2592_v59 = vpop.f32.mrb[7].mxu1  ;;  %v2103_v57 = vld [vmem:[%s3276_s9 + $0x8] sm:$0xff] }
 0xc1b   :  { %v2104_v59 = vld [vmem:[%s3276_s9 + $0x10] sm:$0xff] }
 0xc1c   :  { %v2080_v47 = vadd.f32 %v3147_v46, %v3092_v58  ;;  %v2707_v58 = vpack.c.bf16 %v2103_v57, %v2102_v56 }
 0xc1e   :  { %v3152_v48 = vadd.f32 %v2080_v47, %v2918_v5 }
 0xc20   :  { %v2091_v50 = vmul.f32 %v2437_v49, %v3152_v48 }
 0xc22   :  { %v2100_v54 = vadd.f32 %v2438_v51, %v2091_v50 }
 0xc76   :  { %v1205_v60 = vpop.xlane.xlu0 %1204 }
 0xc77   :  { %2782 = vrcp.f32 %v1205_v60  ;;  %v2105_v60 = vld [vmem:[%s3276_s9 + $0x18] sm:$0xff] }
 0xc7a   :  { %v1370_v61 = vpop.xlane.xlu0 %1369 }
 0xc7b   :  { %2784 = vrcp.f32 %v1370_v61  ;;  %v2711_v61 = vpack.c.bf16 %v2105_v60, %v2104_v59 }
 0xc7e   :  { %v1209_v62 = vpop.permute.xlu0 %1208 }
 0xc7f   :  { %2599 = vmatpush3.msra.mxu1 %v1209_v62  ;;  %v2196_v62 = vld [vmem:[%s3278_s11] sm:$0xff] }
 0xc80   :  { %2608 = vmatprep.subr.mxu1 %v2818_v14 }
 0xc81   :  { %v2783_v63 = vpop.eup %2782 }
 0xc82   :  { %v1207_v0 = vmul.f32 %v2783_v63, %v2779_v53  ;;  %v1598_v9 = vpop.permute.xlu0 %1597  ;;  %v2197_v63 = vld [vmem:[%s3278_s11 + $0x8] sm:$0xff] }
 0xc84   :  { %2601 = vmatmul.mubr.msk.f32.vlgmr.msra.gmra.mrb[8].mxu1 %vm166_vm2, %v1207_v0  ;;  %v2198_v0 = vld [vmem:[%s3278_s11 + $0x10] sm:$0xff] }
 0xc85   :  { %v2785_v2 = vpop.eup %2784  ;;  %2609 = vmatpush3.msra.mxu1 %v1374_v1  ;;  %2610 = vmatprep.mubr.msk.f32.mxu1 %vm2819_vm1, %v2818_v14  ;;  %v2715_v1 = vpack.c.bf16 %v2197_v63, %v2196_v62 }
 0xc86   :  { %v1372_v3 = vmul.f32 %v2785_v2, %v2781_v55  ;;  %2618 = vmatprep.subr.mxu1 %v2818_v14  ;;  %v2199_v2 = vld [vmem:[%s3278_s11 + $0x18] sm:$0xff] }
 0xc88   :  { %2611 = vmatmul.mubr.msk.f32.vlgmr.msra.gmra.mrb[10].mxu1 %vm166_vm2, %v1372_v3  ;;  %v2719_v3 = vpack.c.bf16 %v2199_v2, %v2198_v0 }
 0xc89   :  { %2619 = vmatpush3.msra.mxu1 %v2979_v36  ;;  %2620 = vmatprep.mubr.msk.f32.mxu1 %vm2819_vm1, %v2818_v14  ;;  %v1596_v36 = vpop.permute.xlu0 %1595 }
 0xc8a   :  { %2628 = vmatprep.subr.mxu1 %v2818_v14 }
 0xd57   :  { %v1280_v4 = vpop.f32.mrb[8].mxu1 }
 0xd58   :  { %v2602_v7 = vpop.f32.mrb[9].mxu1  ;;  %2621 = vmatmul.mubr.msk.f32.vlgmr.msra.gmra.mrb[12].mxu1 %vm166_vm2, %v1280_v4  ;;  %v2200_v4 = vld [vmem:[%s3278_s11 + $0x20] sm:$0xff] }
 0xd59   :  { %2630 = vmatprep.mubr.msk.f32.mxu1 %vm2819_vm1, %v2818_v14  ;;  %v2201_v7 = vld [vmem:[%s3278_s11 + $0x28] sm:$0xff] }
 0xd5b   :  { %v1445_v10 = vpop.f32.mrb[10].mxu1 }
 0xd5c   :  { %v2612_v11 = vpop.f32.mrb[11].mxu1  ;;  %2616 = vmatmul.mubr.msk.f32.vlgmr.msra.gmra.mrb[22].mxu0 %vm166_vm2, %v1445_v10  ;;  %v2202_v10 = vld [vmem:[%s3278_s11 + $0x30] sm:$0xff] }
 0xd5d   :  { %2624 = vmatpush3.xpose.msk.msra.mxu0 %vm166_vm2, %v1598_v9  ;;  %2625 = vmatprep.mubr.msk.f32.mxu0 %vm2819_vm1, %v2818_v14  ;;  %v2723_v9 = vpack.c.bf16 %v2201_v7, %v2200_v4  ;;  %v2203_v11 = vld [vmem:[%s3278_s11 + $0x38] sm:$0xff] }
 0xd5e   :  { %2633 = vmatprep.subr.mxu0 %v2818_v14 }
 0xd60   :  { %2626 = vmatmul.mubr.msk.f32.vlgmr.msra.gmra.mrb[24].mxu0 %vm166_vm2, %v1596_v36  ;;  %v2727_v36 = vpack.c.bf16 %v2203_v11, %v2202_v10 }
 0xd61   :  { %2634 = vmatpush3.msra.mxu0 %v3027_v8  ;;  %2635 = vmatprep.mubr.msk.f32.mxu0 %vm2819_vm1, %v2818_v14 }
 0xd62   :  { %2643 = vmatprep.subr.mxu0 %v2818_v14 }
 0xe2b   :  { %v1591_v12 = vpop.f32.mrb[12].mxu1 }
 0xe2c   :  { %v2622_v13 = vpop.f32.mrb[13].mxu1 }
 0xe2d   :  { %v2205_v13 = vld [vmem:[%s3278_s11 + $0x48] sm:$0xff] }
 0xe2f   :  { %v1518_v15 = vpop.f32.mrb[22].mxu0 }
 0xe30   :  { %v1592_v16 = vadd.f32 %v1591_v12, %v1518_v15  ;;  %v2617_v18 = vpop.f32.mrb[23].mxu0  ;;  %v2204_v12 = vld [vmem:[%s3278_s11 + $0x40] sm:$0xff] }
 0xe31   :  { %v2731_v15 = vpack.c.bf16 %v2205_v13, %v2204_v12  ;;  %v2207_v18 = vld [vmem:[%s3278_s11 + $0x58] sm:$0xff] }
 0xe33   :  { %v1669_v19 = vpop.f32.mrb[24].mxu0 }
 0xe34   :  { %v2627_v20 = vpop.f32.mrb[25].mxu0  ;;  %v1673_v21 = vsel %vm166_vm2, %v1669_v19, -inf }
 0xe35   :  { %1674 = vmax.xlane.f32.xlu1 %v1673_v21  ;;  %v2208_v20 = vld [vmem:[%s3278_s11 + $0x60] sm:$0xff]  ;;  %v2209_v21 = vld [vmem:[%s3278_s11 + $0x68] sm:$0xff] }
 0xe46   :  { %1836 = vrot.lane.b32.xlu1 %v2944_v17, %s2828_s16 }
 0xe4a   :  { %1834 = vrot.lane.b32.xlu1 %v3045_v22, %s2829_s17 }
 0xec2   :  { %v1675_v8 = vpop.xlane.xlu1 %1674 }
 0xec3   :  { %v1676_v23 = vsub.f32 %v1669_v19, %v1675_v8  ;;  %v2739_v8 = vpack.c.bf16 %v2209_v21, %v2208_v20 }
 0xec5   :  { %v1677_v24 = vmul.f32 1.442695, %v1676_v23 }
 0xec6   :  { %v1837_v30 = vpop.permute.xlu1 %1836 }
 0xec7   :  { %2786 = vpow2.f32 %v1677_v24 }
 0xeca   :  { %v1835_v31 = vpop.permute.xlu1 %1834 }
 0xed1   :  { %v2787_v25 = vpop.eup %2786 }
 0xed2   :  { %v1679_v26 = vsel %vm166_vm2, %v2787_v25, 0.0 }
 0xed3   :  { %1680 = vadd.xlane.f32.xlu0 %v1679_v26 }
 0xee9   :  { %1684 = vrot.lane.b32.xlu0 %v2944_v17, %s2827_s15 }
 0xf60   :  { %v1681_v27 = vpop.xlane.xlu0 %1680 }
 0xf61   :  { %2788 = vrcp.f32 %v1681_v27 }
 0xf64   :  { %v1685_v28 = vpop.permute.xlu0 %1684 }
 0xf65   :  { %2629 = vmatpush3.msra.mxu1 %v1685_v28 }
 0xf66   :  { %2638 = vmatprep.subr.mxu1 %v2818_v14 }
 0xf6b   :  { %v2789_v29 = vpop.eup %2788 }
 0xf6c   :  { %v1683_v22 = vmul.f32 %v2789_v29, %v2787_v25 }
 0xf6e   :  { %2631 = vmatmul.mubr.msk.f32.vlgmr.msra.gmra.mrb[14].mxu1 %vm166_vm2, %v1683_v22  ;;  %v2211_v22 = vld [vmem:[%s3278_s11 + $0x78] sm:$0xff] }
 0xf6f   :  { %2639 = vmatpush3.xpose.msk.msra.mxu1 %vm166_vm2, %v1837_v30  ;;  %2640 = vmatprep.mubr.msk.f32.mxu1 %vm2819_vm1, %v2818_v14  ;;  %v2210_v30 = vld [vmem:[%s3278_s11 + $0x70] sm:$0xff] }
 0xf70   :  { %2648 = vmatprep.subr.mxu1 %v2818_v14 }
 0xf72   :  { %2641 = vmatmul.mubr.msk.f32.vlgmr.msra.gmra.mrb[16].mxu1 %vm166_vm2, %v1835_v31  ;;  %v2743_v31 = vpack.c.bf16 %v2211_v22, %v2210_v30 }
 0xf73   :  { %2649 = vmatpush3.msra.mxu1 %v3073_v38  ;;  %2650 = vmatprep.mubr.msk.f32.mxu1 %vm2819_vm1, %v2818_v14 }
 0xf74   :  { %2716 = vmatprep.subr.bf16.mxu1 %v2715_v1 }
0x1041   :  { %v1756_v32 = vpop.f32.mrb[14].mxu1 }
0x1042   :  { %v2632_v33 = vpop.f32.mrb[15].mxu1  ;;  %2636 = vmatmul.mubr.msk.f32.vlgmr.msra.gmra.mrb[26].mxu0 %vm166_vm2, %v1756_v32  ;;  %v2439_v32 = vld [vmem:[%s3277_s10] ss:$0 sm:$0xff]  ;;  %s2832_s10 = smov [#allocation2]  }
0x1043   :  { %2645 = vmatprep.mubr.msk.f32.mxu0 %vm2819_vm1, %v2818_v14 }
0x1045   :  { %v1908_v34 = vpop.f32.mrb[16].mxu1 }
0x1046   :  { %v2642_v35 = vpop.f32.mrb[17].mxu1  ;;  %v1912_v37 = vsel %vm166_vm2, %v1908_v34, -inf }
0x1047   :  { %1913 = vmax.xlane.f32.xlu0 %v1912_v37 }
0x105d   :  { %1923 = vrot.lane.b32.xlu0 %v2944_v17, %s2830_s18 }
0x10d4   :  { %v1914_v39 = vpop.xlane.xlu0 %1913 }
0x10d5   :  { %v1915_v38 = vsub.f32 %v1908_v34, %v1914_v39 }
0x10d7   :  { %v1916_v40 = vmul.f32 1.442695, %v1915_v38  ;;  %v2442_v38 = vld [vmem:[%s3279_s12] ss:$0 sm:$0xff]  ;;  %s2391_s12 = sshll.u32 %s2832_s10, 4  ;;  %s2392_s12 = int_to_ptr.vmem [resolvable:$true] %s2391_s12 }
0x10d8   :  { %v1924_v41 = vpop.permute.xlu0 %1923  ;;  %p2799_p1 = scmp.lt.s32.totalorder %s2392_s12, %s2392_s12 }
0x10d9   :  { %2790 = vpow2.f32 %v1916_v40  ;;  %2644 = vmatpush3.msra.mxu0 %v1924_v41 }
0x10da   :  { %2708 = vmatprep.subr.bf16.mxu0 %v2707_v58 }
0x10e3   :  { %v2791_v42 = vpop.eup %2790 }
0x10e4   :  { %v1918_v43 = vsel %vm166_vm2, %v2791_v42, 0.0 }
0x10e5   :  { %1919 = vadd.xlane.f32.xlu1 %v1918_v43 }
0x1115   :  { %v1829_v44 = vpop.f32.mrb[26].mxu0 }
0x1116   :  { %v3142_v14 = vadd.f32 %v1829_v44, %v1592_v16  ;;  %v2637_v45 = vpop.f32.mrb[27].mxu0  ;;  %v2206_v16 = vld [vmem:[%s3278_s11 + $0x50] sm:$0xff]  ;;  %s2831_s11 = smov 32  }
0x1117   :  { %v2735_v19 = vpack.c.bf16 %v2207_v18, %v2206_v16 }
0x1172   :  { %v1920_v17 = vpop.xlane.xlu1 %1919 }
0x1173   :  { %2792 = vrcp.f32 %v1920_v17 }
0x117d   :  { %v2793_v52 = vpop.eup %2792 }
0x117e   :  { %v1922_v53 = vmul.f32 %v2793_v52, %v2791_v42 }
0x1180   :  { %2646 = vmatmul.mubr.msk.f32.vlgmr.msra.gmra.mrb[28].mxu0 %vm166_vm2, %v1922_v53 }
0x1181   :  { %2661 = vmatprep.mubr.msk.f32.mxu0 %vm76_vm0, %v2100_v54  ;;  %2710 = vmatpush3.bf16.msra.mxu0 %v2707_v58 }
0x1182   :  { %2712 = vmatprep.subr.bf16.mxu0 %v2711_v61 }
0x1185   :  { %2714 = vmatpush3.bf16.msra.mxu0 %v2711_v61 }
0x1253   :  { %v1995_v55 = vpop.f32.mrb[28].mxu0 }
0x1254   :  { %v2647_v5 = vpop.f32.mrb[29].mxu0  ;;  %2651 = vmatmul.mubr.msk.f32.vlgmr.msra.gmra.mrb[18].mxu1 %vm166_vm2, %v1995_v55 }
0x1255   :  { %2718 = vmatpush3.bf16.msra.mxu1 %v2715_v1 }
0x1256   :  { %2720 = vmatprep.subr.bf16.mxu1 %v2719_v3 }
0x1259   :  { %2722 = vmatpush3.bf16.msra.mxu1 %v2719_v3 }
0x125a   :  { %2724 = vmatprep.subr.bf16.mxu1 %v2723_v9 }
0x125d   :  { %2726 = vmatpush3.bf16.msra.mxu1 %v2723_v9 }
0x125e   :  { %2728 = vmatprep.subr.bf16.mxu1 %v2727_v36 }
0x1261   :  { %2730 = vmatpush3.bf16.msra.mxu1 %v2727_v36 }
0x1262   :  { %2732 = vmatprep.subr.bf16.mxu1 %v2731_v15 }
0x1265   :  { %2734 = vmatpush3.bf16.msra.mxu1 %v2731_v15 }
0x1266   :  { %2736 = vmatprep.subr.bf16.mxu1 %v2735_v19 }
0x1269   :  { %2738 = vmatpush3.bf16.msra.mxu1 %v2735_v19 }
0x126a   :  { %2740 = vmatprep.subr.bf16.mxu1 %v2739_v8 }
0x126d   :  { %2742 = vmatpush3.bf16.msra.mxu1 %v2739_v8 }
0x126e   :  { %2744 = vmatprep.subr.bf16.mxu1 %v2743_v31 }
0x1271   :  { %2746 = vmatpush3.bf16.msra.mxu1 %v2743_v31 }
0x1327   :  { %v2068_v23 = vpop.f32.mrb[18].mxu1 }
0x1328   :  { %v2072_v24 = vadd.f32 %v2068_v23, %v3142_v14  ;;  %v2652_v25 = vpop.f32.mrb[19].mxu1 }
0x132a   :  { %v2081_v26 = vadd.f32 %v3147_v46, %v2072_v24 }
0x132c   :  { %v2083_v27 = vadd.f32 %v2081_v26, %v2923_v6 }
0x132e   :  { %v2092_v28 = vmul.f32 %v2437_v49, %v2083_v27 }
0x1330   :  { %v2101_v29 = vadd.f32 %v2438_v51, %v2092_v28 }
0x1332   :  { %2662 = vmatmul.mubr.msk.f32.vlgmr.msra.gmra.mrb[30].mxu0 %vm76_vm0, %v2101_v29 }
0x1405   :  { %v2663_v6 = vpop.f32.mrb[30].mxu0 }
0x1406   :  { %v2191_v33 = vadd.f32 %v2663_v6, %v2439_v32  ;;  %v2185_v34 = vpop.f32.mrb[31].mxu0 }
0x1407   :  { %v2186_v35 = vadd.f32 %v2439_v32, %v2185_v34 }
0x1408   :  { %v2195_v39 = vmax.f32 %v2191_v33, 0.0 }
0x1409   :  { %v2194_v37 = vmax.f32 %v2186_v35, 0.0 }
0x140b   :  { %2696 = vmatprep.mubr.f32.mxu1 %v2194_v37 }
0x140c   :  { %2697 = vmatmul.mubr.f32.vlgmr.msra.gmra.mrb[20].mxu1 %v2195_v39 }
0x14df   :  { %v2698_v40 = vpop.f32.mrb[20].mxu1 }
0x14e0   :  { %v2291_v41 = vadd.f32 %v2698_v40, %v2442_v38  ;;  %v2285_v42 = vpop.f32.mrb[21].mxu1 }
0x14e1   :  { %v2286_v45 = vadd.f32 %v2442_v38, %v2285_v42 }
0x14e2   :  { %v2295_v43 = vadd.f32 %v2291_v41, %v2083_v27 }
0x14e3   :  { %v2294_v47 = vadd.f32 %v2286_v45, %v3152_v48 }
0x14e4   :  { %v2346_v44 = vrot.slane %v2295_v43, 5  ;;  %v2332_v14 = vrot.slane %v2295_v43, 1  ;;  %v2350_v46 = vrot.slane %v2295_v43, 6  ;;  %v2336_v17 = vrot.slane %v2295_v43, 2 }
0x14e5   :  { %v2354_v49 = vrot.slane %v2295_v43, 7  ;;  %v2340_v50 = vrot.slane %v2295_v43, 3  ;;  %v2311_v51 = vrot.slane %v2294_v47, 5  ;;  %v2297_v52 = vrot.slane %v2294_v47, 1 }
0x14e6   :  { %2347 = vrot.lane.b32.xlu0 %v2346_v44, %s2831_s11  ;;  %2333 = vrot.lane.b32.xlu1 %v2332_v14, %s2831_s11  ;;  %v2315_v53 = vrot.slane %v2294_v47, 6  ;;  %v2301_v54 = vrot.slane %v2294_v47, 2  ;;  %v2319_v55 = vrot.slane %v2294_v47, 7  ;;  %v2305_v5 = vrot.slane %v2294_v47, 3 }
0x14e7   :  { %v2344_v63 = vrot.slane %v2295_v43, 4  ;;  %v2309_v11 = vrot.slane %v2294_v47, 4 }
0x14ea   :  { %2351 = vrot.lane.b32.xlu0 %v2350_v46, %s2820_s2  ;;  %2337 = vrot.lane.b32.xlu1 %v2336_v17, %s2820_s2 }
0x14ee   :  { %2355 = vrot.lane.b32.xlu0 %v2354_v49, %s2821_s3  ;;  %2341 = vrot.lane.b32.xlu1 %v2340_v50, %s2821_s3 }
0x14f2   :  { %2312 = vrot.lane.b32.xlu0 %v2311_v51, %s2831_s11  ;;  %2298 = vrot.lane.b32.xlu1 %v2297_v52, %s2831_s11 }
0x14f6   :  { %2316 = vrot.lane.b32.xlu0 %v2315_v53, %s2820_s2  ;;  %2302 = vrot.lane.b32.xlu1 %v2301_v54, %s2820_s2  ;;  %s2794_s2 = scalar_lea.vmem %s2392_s12, 64 }
0x14f7   :  { %p2795_p0 = scmp.ne.s32.totalorder %s2392_s12, %s2794_s2  ;;  %p2800_p2 = scmp.lt.s32.totalorder %s2794_s2, %s2794_s2 }
0x14f9   :  { %p2801_p3 = por %p2800_p2, %p2799_p1 }
0x14fa   :  { %2320 = vrot.lane.b32.xlu0 %v2319_v55, %s2821_s3  ;;  %2306 = vrot.lane.b32.xlu1 %v2305_v5, %s2821_s3 }
0x14fb   :  { %p2802_p4 = pnand %p2801_p3, %p2795_p0 }
0x1558   :  { %v2348_v48 = vpop.permute.xlu0 %2347  ;;  %v2334_v56 = vpop.permute.xlu1 %2333 }
0x1559   :  { %v2361_v0 = vsel %vm76_vm0, %v2344_v63, %v2348_v48  ;;  %v2358_v1 = vsel %vm76_vm0, %v2295_v43, %v2334_v56 }
0x155c   :  { %v2352_v57 = vpop.permute.xlu0 %2351  ;;  %v2338_v58 = vpop.permute.xlu1 %2337 }
0x155d   :  { %v2362_v2 = vsel %vm2324_vm3, %v2361_v0, %v2352_v57  ;;  %v2359_v3 = vsel %vm2324_vm3, %v2358_v1, %v2338_v58 }
0x1560   :  { %v2356_v59 = vpop.permute.xlu0 %2355  ;;  %v2342_v60 = vpop.permute.xlu1 %2341 }
0x1561   :  { %v2363_v9 = vsel %vm2326_vm4, %v2362_v2, %v2356_v59  ;;  %v2360_v10 = vsel %vm2326_vm4, %v2359_v3, %v2342_v60 }
0x1562   :  { %v2367_v13 = vrot.slane %v2363_v9, 7  ;;  %v2366_v15 = vrot.slane %v2360_v10, 7 }
0x1564   :  { %v2313_v61 = vpop.permute.xlu0 %2312  ;;  %v2299_v62 = vpop.permute.xlu1 %2298 }
0x1565   :  { %v2328_v36 = vsel %vm76_vm0, %v2309_v11, %v2313_v61  ;;  %v2323_v12 = vsel %vm76_vm0, %v2294_v47, %v2299_v62 }
0x1568   :  { %v2317_v4 = vpop.permute.xlu0 %2316  ;;  %v2303_v7 = vpop.permute.xlu1 %2302 }
0x1569   :  { %v2329_v16 = vsel %vm2324_vm3, %v2328_v36, %v2317_v4  ;;  %v2325_v18 = vsel %vm2324_vm3, %v2323_v12, %v2303_v7 }
0x156c   :  { %v2321_v19 = vpop.permute.xlu0 %2320  ;;  %v2307_v20 = vpop.permute.xlu1 %2306 }
0x156d   :  { %v2330_v21 = vsel %vm2326_vm4, %v2329_v16, %v2321_v19  ;;  %v2327_v8 = vsel %vm2326_vm4, %v2325_v18, %v2307_v20 }
0x156e   :  { %v2371_v23 = vsel %vm2370_vm5, %v2327_v8, %v2366_v15  ;;  %v2372_v24 = vsel %vm2370_vm5, %v2330_v21, %v2367_v13 }
0x156f   :  { %v2375_v25 = vcombine.low %v2371_v23, %v2372_v24 }
0x1571   :  { %2443 = vst.sshfl [vmem:[#allocation2] sm:$0x33 pattern:$0x76325410] %v2375_v25 }
0x1572   :  { %2805 = shalt.err (!%p2802_p4)
}
0x1573   :  { %s2806_s23 = scalar_lea.hbm %s3280_s13, 64 }
0x1574   :  { %p2807_p5 = scmp.ne.s32.totalorder %s3280_s13, %s2806_s23  ;;  %p2810_p6 = scmp.lt.u32.totalorder %s2806_s23, %s3280_s13 }
0x1576   :  { %p2812_p7 = pnand %p2810_p6, %p2807_p5 }
0x1578   :  { %2815 = shalt.err (!%p2812_p7)
}
0x1579   :  { %2394 = dma.vmem_to_hbm [thread:$0]  %s2392_s12, 64, %s3280_s13, [#allocation3]  }
0x157a   :  { %2816 = dma.done.wait [#allocation3], 64  }
0x157b   :  { %2817 = vsyncadd [#allocation3], 4294967232 }
0x157c   :  { %2398 = vsyncpa [#allocation3], 1 }

</bundles_post_ra>
